<compile_context>
chip_gen: v6e
topology: v6e:2x2x1
jax: 0.10.0
libtpu: 0.0.40
codegen_flags: <defaults>
</compile_context>

<pallas_src>
import functools

import jax
import jax.numpy as jnp
import numpy as np
from jax.experimental import pallas as pl
from jax.experimental.pallas import tpu as pltpu


def _round_up(x, m):
    return (x + m - 1) // m * m


def _pick_tile(dim, max_tile, unit):
    """Largest multiple of `unit` that divides `dim` and is <= max_tile (dim % unit == 0)."""
    t = min(dim, max_tile)
    t -= t % unit
    while dim % t:
        t -= unit
    return t


# ----------------------------------------------------------------------------
# Pallas kernel: tiled  O = W @ X + b  (+ optional ReLU), fp32 accumulation.
#   W: (R, K)   X: (K, M)   b: (R, 1)   O: (R, M)
# grid = (R/TR, M/TM, K/TK); K is the innermost reduction axis, the output tile
# stays resident in a VMEM fp32 accumulator across it (P1 + P3 pattern).
# ----------------------------------------------------------------------------
def _matmul_bias_kernel(w_ref, x_ref, b_ref, o_ref, acc_ref, *, relu: bool):
    @pl.when(pl.program_id(2) == 0)
    def _init():
        acc_ref[...] = jnp.zeros_like(acc_ref)

    acc_ref[...] += jnp.dot(w_ref[...], x_ref[...],
                            preferred_element_type=jnp.float32)

    @pl.when(pl.program_id(2) == pl.num_programs(2) - 1)
    def _finalize():
        out = acc_ref[...] + b_ref[...]          # (TR, 1) broadcasts over lanes
        if relu:
            out = jnp.maximum(out, 0.0)
        o_ref[...] = out.astype(o_ref.dtype)


def matmul_bias_T(w, x, b, *, relu, out_dtype=jnp.float32,
                  max_tr=256, max_tm=512, max_tk=512):
    """O = w @ x + b[:, None] (optional ReLU). Output lane dim is M (lane-dense)."""
    R, K = w.shape
    K2, M = x.shape
    assert K == K2

    # Zero-pad to (8, 128)-aligned tiles. Padding contributes 0 to the dot; padded
    # output rows/cols are sliced away below.
    Rp, Kp, Mp = _round_up(R, 8), _round_up(K, 128), _round_up(M, 128)
    if (Rp, Kp) != (R, K):
        w = jnp.pad(w, ((0, Rp - R), (0, Kp - K)))
    if (Kp, Mp) != (K, M):
        x = jnp.pad(x, ((0, Kp - K), (0, Mp - M)))
    if Rp != R:
        b = jnp.pad(b, (0, Rp - R))

    TR = _pick_tile(Rp, max_tr, 8)
    TM = _pick_tile(Mp, max_tm, 128)
    TK = _pick_tile(Kp, max_tk, 128)
    grid = (Rp // TR, Mp // TM, Kp // TK)

    kernel = functools.partial(_matmul_bias_kernel, relu=relu)
    out = pl.pallas_call(
        kernel,
        out_shape=jax.ShapeDtypeStruct((Rp, Mp), out_dtype),
        grid_spec=pltpu.PrefetchScalarGridSpec(
            num_scalar_prefetch=0,
            grid=grid,
            in_specs=[
                pl.BlockSpec((TR, TK), lambda r, m, k: (r, k)),
                pl.BlockSpec((TK, TM), lambda r, m, k: (k, m)),
                pl.BlockSpec((TR, 1), lambda r, m, k: (r, 0)),
            ],
            out_specs=pl.BlockSpec((TR, TM), lambda r, m, k: (r, m)),
            scratch_shapes=[pltpu.VMEM((TR, TM), jnp.float32)],
        ),
        compiler_params=pltpu.CompilerParams(
            dimension_semantics=("parallel", "parallel", "arbitrary")),
    )(w, x, b.astype(jnp.float32).reshape(Rp, 1))

    if (Rp, Mp) != (R, M):
        out = out[:R, :M]
    return out


# ----------------------------------------------------------------------------
# Channel-major im2col: a (C, N, H, W) -> cols^T (C*k*k, N*OH*OW).
# Row order (C, kh, kw) matches PyTorch w.reshape(Cout, -1); no lane-crossing
# transpose is needed (channel stays the leading axis, W/OW stays the lane axis).
# TODO(synk): fuse patch extraction into the Pallas kernel (accumulate k*k shifted
# (Cout,Cin)x(Cin,M) taps) to avoid materializing the k^2-inflated cols in HBM.
# ----------------------------------------------------------------------------
def im2col_cm(a, k, s):
    C, N, H, W = a.shape
    OH = (H - k) // s + 1
    OW = (W - k) // s + 1
    taps = []
    for dh in range(k):
        for dw in range(k):
            taps.append(a[:, :, dh:dh + OH * s:s, dw:dw + OW * s:s])  # (C,N,OH,OW)
    cols = jnp.stack(taps, axis=1)                     # (C, k*k, N, OH, OW)
    cols = cols.reshape(C * k * k, N * OH * OW)        # rows: (C,kh,kw), cols: (N,OH,OW)
    return cols, OH, OW


def conv_layer(a, w_mat, b, *, k, s, dtype):
    """a: (Cin, N, H, W) channel-major; w_mat: (Cout, Cin*k*k); returns (Cout, N, OH, OW)."""
    C, N, H, W = a.shape
    cout = w_mat.shape[0]
    cols, OH, OW = im2col_cm(a, k, s)
    y = matmul_bias_T(w_mat, cols.astype(dtype), b, relu=True, out_dtype=dtype)
    return y.reshape(cout, N, OH, OW)


# ----------------------------------------------------------------------------
# Parameter init (PyTorch layout) + one-time conversion to matmul-ready layout.
# ----------------------------------------------------------------------------
def _conv_out(h, k, s):
    return (h - k) // s + 1


def init_params(key, observation_size):
    C, H, W = observation_size
    h1, w1 = _conv_out(H, 8, 4), _conv_out(W, 8, 4)
    h2, w2 = _conv_out(h1, 4, 2), _conv_out(w1, 4, 2)
    h3, w3 = _conv_out(h2, 3, 1), _conv_out(w2, 3, 1)
    n_flatten = 64 * h3 * w3

    def uinit(key, shape, fan_in):
        bound = 1.0 / np.sqrt(fan_in)
        return jax.random.uniform(key, shape, jnp.float32, -bound, bound)

    ks = jax.random.split(key, 8)
    params = {
        "w1": uinit(ks[0], (32, C, 8, 8), C * 8 * 8),
        "b1": uinit(ks[1], (32,), C * 8 * 8),
        "w2": uinit(ks[2], (64, 32, 4, 4), 32 * 4 * 4),
        "b2": uinit(ks[3], (64,), 32 * 4 * 4),
        "w3": uinit(ks[4], (64, 64, 3, 3), 64 * 3 * 3),
        "b3": uinit(ks[5], (64,), 64 * 3 * 3),
        "wl": uinit(ks[6], (512, n_flatten), n_flatten),
        "bl": uinit(ks[7], (512,), n_flatten),
    }
    return params, n_flatten


def prepare_params(raw, dtype=jnp.bfloat16):
    """One-time (outside the forward) reshape/cast into matmul-ready layout."""
    return {
        "w1": raw["w1"].reshape(32, -1).astype(dtype),   # (32,  Cin*8*8)
        "b1": raw["b1"].astype(jnp.float32),
        "w2": raw["w2"].reshape(64, -1).astype(dtype),   # (64,  32*4*4)
        "b2": raw["b2"].astype(jnp.float32),
        "w3": raw["w3"].reshape(64, -1).astype(dtype),   # (64,  64*3*3)
        "b3": raw["b3"].astype(jnp.float32),
        "wl": raw["wl"].astype(dtype),                   # (512, n_flatten) — no transpose needed
        "bl": raw["bl"].astype(jnp.float32),
    }


# ----------------------------------------------------------------------------
# Forward pass (matches NatureCNN.forward).  Public API takes NCHW float32.
# ----------------------------------------------------------------------------
def nature_cnn_forward(prep, x, *, dtype=jnp.bfloat16):
    N = x.shape[0]
    a = jnp.transpose(x, (1, 0, 2, 3)).astype(dtype)       # (C, N, H, W) channel-major
    a = conv_layer(a, prep["w1"], prep["b1"], k=8, s=4, dtype=dtype)
    a = conv_layer(a, prep["w2"], prep["b2"], k=4, s=2, dtype=dtype)
    a = conv_layer(a, prep["w3"], prep["b3"], k=3, s=1, dtype=dtype)
    # Flatten in PyTorch (C, H, W) order -> rows of flat^T; columns = batch.
    C3, _, H3, W3 = a.shape
    flat_T = jnp.transpose(a, (0, 2, 3, 1)).reshape(C3 * H3 * W3, N).astype(dtype)
    out_T = matmul_bias_T(prep["wl"], flat_T, prep["bl"], relu=False,
                          out_dtype=jnp.float32)            # (512, N)
    return out_T.T                                           # (N, 512)


# Plain-JAX reference (fp32) for correctness checks.
def _ref_forward(params, x):
    def conv(x, w, b, s):
        y = jax.lax.conv_general_dilated(
            x, w, (s, s), "VALID", dimension_numbers=("NCHW", "OIHW", "NCHW"))
        return y + b.reshape(1, -1, 1, 1)

    h = jax.nn.relu(conv(x, params["w1"], params["b1"], 4))
    h = jax.nn.relu(conv(h, params["w2"], params["b2"], 2))
    h = jax.nn.relu(conv(h, params["w3"], params["b3"], 1))
    h = h.reshape(h.shape[0], -1)
    return h @ params["wl"].T + params["bl"]


if __name__ == "__main__":
    # Smallest valid spatial size for the Nature stride pattern: 36 -> 8 -> 3 -> 1.
    observation_size = (4, 36, 36)
    batch = 2

    key = jax.random.PRNGKey(0)
    pkey, xkey = jax.random.split(key)
    raw, n_flatten = init_params(pkey, observation_size)
    x = jax.random.normal(xkey, (batch, *observation_size), jnp.float32)
    ref = _ref_forward(raw, x)

    # fp32 path: tight structural check (tiling / layout / accumulation correctness).
    prep32 = prepare_params(raw, jnp.float32)
    fwd32 = jax.jit(functools.partial(nature_cnn_forward, dtype=jnp.float32))
    out32 = jax.block_until_ready(fwd32(prep32, x))
    assert out32.shape == (batch, 512), out32.shape
    np.testing.assert_allclose(np.asarray(out32), np.asarray(ref), rtol=1e-3, atol=1e-3)

    # bf16 MXU path (production config): bf16 inputs, fp32 accumulation, loose check.
    prep16 = prepare_params(raw, jnp.bfloat16)
    fwd16 = jax.jit(functools.partial(nature_cnn_forward, dtype=jnp.bfloat16))
    out16 = jax.block_until_ready(fwd16(prep16, x))
    assert out16.shape == (batch, 512), out16.shape
    np.testing.assert_allclose(np.asarray(out16), np.asarray(ref), rtol=2e-2, atol=2e-2)

    print("KERNEL_OK")
</pallas_src>

<mosaic_0001>
module attributes {stable_mosaic.version = 11 : i64} {
  func.func @_matmul_bias_kernel(%arg0: i32, %arg1: i32, %arg2: i32, %arg3: memref<32x256xf32, #tpu.memory_space<vmem>>, %arg4: memref<256x128xf32, #tpu.memory_space<vmem>>, %arg5: memref<32x1xf32, #tpu.memory_space<vmem>>, %arg6: memref<32x128xf32, #tpu.memory_space<vmem>>, %arg7: memref<32x128xf32, #tpu.memory_space<vmem>>) attributes {dimension_semantics = [#tpu.dimension_semantics<parallel>, #tpu.dimension_semantics<parallel>, #tpu.dimension_semantics<arbitrary>], iteration_bounds = array<i64: 1, 1, 1>, scalar_prefetch = 0 : i64, scratch_operands = 1 : i64, tpu.core_type = #tpu.core_type<tc>, window_params = [{transform_indices = @transform_0, window_bounds = array<i64: 32, 256>}, {transform_indices = @transform_1, window_bounds = array<i64: 256, 128>}, {transform_indices = @transform_2, window_bounds = array<i64: 32, 1>}, {transform_indices = @transform_3, window_bounds = array<i64: 32, 128>}]} {
    %c0_i32 = arith.constant 0 : i32
    %0 = arith.cmpi eq, %arg2, %c0_i32 : i32
    %1 = arith.extui %0 : i1 to i32
    %c0_i32_0 = arith.constant 0 : i32
    %2 = arith.cmpi ne, %1, %c0_i32_0 : i32
    scf.if %2 {
      %cst_10 = arith.constant 0.000000e+00 : f32
      %12 = vector.broadcast %cst_10 : f32 to vector<32x128xf32>
      %c0_11 = arith.constant 0 : index
      %c0_12 = arith.constant 0 : index
      %13 = vector.load %arg7[%c0_11, %c0_12] : memref<32x128xf32, #tpu.memory_space<vmem>>, vector<32x128xf32>
      tpu.vector_store %arg7[%c0_11, %c0_12], %12 {strides = array<i32>} : memref<32x128xf32, #tpu.memory_space<vmem>>, vector<32x128xf32>,
    } else {
    }
    %c0 = arith.constant 0 : index
    %c0_1 = arith.constant 0 : index
    %3 = vector.load %arg7[%c0, %c0_1] : memref<32x128xf32, #tpu.memory_space<vmem>>, vector<32x128xf32>
    %c0_2 = arith.constant 0 : index
    %c0_3 = arith.constant 0 : index
    %4 = vector.load %arg3[%c0_2, %c0_3] : memref<32x256xf32, #tpu.memory_space<vmem>>, vector<32x256xf32>
    %c0_4 = arith.constant 0 : index
    %c0_5 = arith.constant 0 : index
    %5 = vector.load %arg4[%c0_4, %c0_5] : memref<256x128xf32, #tpu.memory_space<vmem>>, vector<256x128xf32>
    %cst = arith.constant dense<0.000000e+00> : vector<32x128xf32>
    %6 = tpu.matmul %4, %5, %cst {dimension_numbers = #tpu.dot_dimension_numbers<[1], [0], [0], [1], [0, 0, 1, 1], [], []>} : vector<32x256xf32>, vector<256x128xf32>, vector<32x128xf32> -> vector<32x128xf32>
    %7 = arith.addf %3, %6 : vector<32x128xf32>
    %c0_6 = arith.constant 0 : index
    %c0_7 = arith.constant 0 : index
    %8 = vector.load %arg7[%c0_6, %c0_7] : memref<32x128xf32, #tpu.memory_space<vmem>>, vector<32x128xf32>
    tpu.vector_store %arg7[%c0_6, %c0_7], %7 {strides = array<i32>} : memref<32x128xf32, #tpu.memory_space<vmem>>, vector<32x128xf32>,
    %c0_i32_8 = arith.constant 0 : i32
    %9 = arith.cmpi eq, %arg2, %c0_i32_8 : i32
    %10 = arith.extui %9 : i1 to i32
    %c0_i32_9 = arith.constant 0 : i32
    %11 = arith.cmpi ne, %10, %c0_i32_9 : i32
    scf.if %11 {
      %c0_10 = arith.constant 0 : index
      %c0_11 = arith.constant 0 : index
      %12 = vector.load %arg7[%c0_10, %c0_11] : memref<32x128xf32, #tpu.memory_space<vmem>>, vector<32x128xf32>
      %c0_12 = arith.constant 0 : index
      %c0_13 = arith.constant 0 : index
      %13 = vector.load %arg5[%c0_12, %c0_13] : memref<32x1xf32, #tpu.memory_space<vmem>>, vector<32x1xf32>
      %14 = vector.broadcast %13 : vector<32x1xf32> to vector<32x128xf32>
      %15 = arith.addf %12, %14 : vector<32x128xf32>
      %cst_14 = arith.constant 0.000000e+00 : f32
      %16 = vector.broadcast %cst_14 : f32 to vector<32x128xf32>
      %17 = arith.maximumf %15, %16 : vector<32x128xf32>
      %c0_15 = arith.constant 0 : index
      %c0_16 = arith.constant 0 : index
      %18 = vector.load %arg6[%c0_15, %c0_16] : memref<32x128xf32, #tpu.memory_space<vmem>>, vector<32x128xf32>
      tpu.vector_store %arg6[%c0_15, %c0_16], %17 {strides = array<i32>} : memref<32x128xf32, #tpu.memory_space<vmem>>, vector<32x128xf32>,
    } else {
    }
    return
  }
  func.func @transform_0(%arg0: i32, %arg1: i32, %arg2: i32) -> (i32, i32) {
    %c0_i32 = arith.constant 0 : i32
    return %arg0, %arg2 : i32, i32
  }
  func.func @transform_1(%arg0: i32, %arg1: i32, %arg2: i32) -> (i32, i32) {
    %c0_i32 = arith.constant 0 : i32
    return %arg2, %arg1 : i32, i32
  }
  func.func @transform_2(%arg0: i32, %arg1: i32, %arg2: i32) -> (i32, i32) {
    %c0_i32 = arith.constant 0 : i32
    %c0_i32_0 = arith.constant 0 : i32
    return %arg0, %c0_i32 : i32, i32
  }
  func.func @transform_3(%arg0: i32, %arg1: i32, %arg2: i32) -> (i32, i32) {
    %c0_i32 = arith.constant 0 : i32
    return %arg0, %arg1 : i32, i32
  }
}

module attributes {stable_mosaic.version = 11 : i64} {
  func.func @_matmul_bias_kernel(%arg0: i32, %arg1: i32, %arg2: i32, %arg3: memref<64x512xf32, #tpu.memory_space<vmem>>, %arg4: memref<512x128xf32, #tpu.memory_space<vmem>>, %arg5: memref<64x1xf32, #tpu.memory_space<vmem>>, %arg6: memref<64x128xf32, #tpu.memory_space<vmem>>, %arg7: memref<64x128xf32, #tpu.memory_space<vmem>>) attributes {dimension_semantics = [#tpu.dimension_semantics<parallel>, #tpu.dimension_semantics<parallel>, #tpu.dimension_semantics<arbitrary>], iteration_bounds = array<i64: 1, 1, 1>, scalar_prefetch = 0 : i64, scratch_operands = 1 : i64, tpu.core_type = #tpu.core_type<tc>, window_params = [{transform_indices = @transform_0, window_bounds = array<i64: 64, 512>}, {transform_indices = @transform_1, window_bounds = array<i64: 512, 128>}, {transform_indices = @transform_2, window_bounds = array<i64: 64, 1>}, {transform_indices = @transform_3, window_bounds = array<i64: 64, 128>}]} {
    %c0_i32 = arith.constant 0 : i32
    %0 = arith.cmpi eq, %arg2, %c0_i32 : i32
    %1 = arith.extui %0 : i1 to i32
    %c0_i32_0 = arith.constant 0 : i32
    %2 = arith.cmpi ne, %1, %c0_i32_0 : i32
    scf.if %2 {
      %cst_10 = arith.constant 0.000000e+00 : f32
      %12 = vector.broadcast %cst_10 : f32 to vector<64x128xf32>
      %c0_11 = arith.constant 0 : index
      %c0_12 = arith.constant 0 : index
      %13 = vector.load %arg7[%c0_11, %c0_12] : memref<64x128xf32, #tpu.memory_space<vmem>>, vector<64x128xf32>
      tpu.vector_store %arg7[%c0_11, %c0_12], %12 {strides = array<i32>} : memref<64x128xf32, #tpu.memory_space<vmem>>, vector<64x128xf32>,
    } else {
    }
    %c0 = arith.constant 0 : index
    %c0_1 = arith.constant 0 : index
    %3 = vector.load %arg7[%c0, %c0_1] : memref<64x128xf32, #tpu.memory_space<vmem>>, vector<64x128xf32>
    %c0_2 = arith.constant 0 : index
    %c0_3 = arith.constant 0 : index
    %4 = vector.load %arg3[%c0_2, %c0_3] : memref<64x512xf32, #tpu.memory_space<vmem>>, vector<64x512xf32>
    %c0_4 = arith.constant 0 : index
    %c0_5 = arith.constant 0 : index
    %5 = vector.load %arg4[%c0_4, %c0_5] : memref<512x128xf32, #tpu.memory_space<vmem>>, vector<512x128xf32>
    %cst = arith.constant dense<0.000000e+00> : vector<64x128xf32>
    %6 = tpu.matmul %4, %5, %cst {dimension_numbers = #tpu.dot_dimension_numbers<[1], [0], [0], [1], [0, 0, 1, 1], [], []>} : vector<64x512xf32>, vector<512x128xf32>, vector<64x128xf32> -> vector<64x128xf32>
    %7 = arith.addf %3, %6 : vector<64x128xf32>
    %c0_6 = arith.constant 0 : index
    %c0_7 = arith.constant 0 : index
    %8 = vector.load %arg7[%c0_6, %c0_7] : memref<64x128xf32, #tpu.memory_space<vmem>>, vector<64x128xf32>
    tpu.vector_store %arg7[%c0_6, %c0_7], %7 {strides = array<i32>} : memref<64x128xf32, #tpu.memory_space<vmem>>, vector<64x128xf32>,
    %c0_i32_8 = arith.constant 0 : i32
    %9 = arith.cmpi eq, %arg2, %c0_i32_8 : i32
    %10 = arith.extui %9 : i1 to i32
    %c0_i32_9 = arith.constant 0 : i32
    %11 = arith.cmpi ne, %10, %c0_i32_9 : i32
    scf.if %11 {
      %c0_10 = arith.constant 0 : index
      %c0_11 = arith.constant 0 : index
      %12 = vector.load %arg7[%c0_10, %c0_11] : memref<64x128xf32, #tpu.memory_space<vmem>>, vector<64x128xf32>
      %c0_12 = arith.constant 0 : index
      %c0_13 = arith.constant 0 : index
      %13 = vector.load %arg5[%c0_12, %c0_13] : memref<64x1xf32, #tpu.memory_space<vmem>>, vector<64x1xf32>
      %14 = vector.broadcast %13 : vector<64x1xf32> to vector<64x128xf32>
      %15 = arith.addf %12, %14 : vector<64x128xf32>
      %cst_14 = arith.constant 0.000000e+00 : f32
      %16 = vector.broadcast %cst_14 : f32 to vector<64x128xf32>
      %17 = arith.maximumf %15, %16 : vector<64x128xf32>
      %c0_15 = arith.constant 0 : index
      %c0_16 = arith.constant 0 : index
      %18 = vector.load %arg6[%c0_15, %c0_16] : memref<64x128xf32, #tpu.memory_space<vmem>>, vector<64x128xf32>
      tpu.vector_store %arg6[%c0_15, %c0_16], %17 {strides = array<i32>} : memref<64x128xf32, #tpu.memory_space<vmem>>, vector<64x128xf32>,
    } else {
    }
    return
  }
  func.func @transform_0(%arg0: i32, %arg1: i32, %arg2: i32) -> (i32, i32) {
    %c0_i32 = arith.constant 0 : i32
    return %arg0, %arg2 : i32, i32
  }
  func.func @transform_1(%arg0: i32, %arg1: i32, %arg2: i32) -> (i32, i32) {
    %c0_i32 = arith.constant 0 : i32
    return %arg2, %arg1 : i32, i32
  }
  func.func @transform_2(%arg0: i32, %arg1: i32, %arg2: i32) -> (i32, i32) {
    %c0_i32 = arith.constant 0 : i32
    %c0_i32_0 = arith.constant 0 : i32
    return %arg0, %c0_i32 : i32, i32
  }
  func.func @transform_3(%arg0: i32, %arg1: i32, %arg2: i32) -> (i32, i32) {
    %c0_i32 = arith.constant 0 : i32
    return %arg0, %arg1 : i32, i32
  }
}

module attributes {stable_mosaic.version = 11 : i64} {
  func.func @_matmul_bias_kernel(%arg0: i32, %arg1: i32, %arg2: i32, %arg3: memref<64x128xf32, #tpu.memory_space<vmem>>, %arg4: memref<128x128xf32, #tpu.memory_space<vmem>>, %arg5: memref<64x1xf32, #tpu.memory_space<vmem>>, %arg6: memref<64x128xf32, #tpu.memory_space<vmem>>, %arg7: memref<64x128xf32, #tpu.memory_space<vmem>>) attributes {dimension_semantics = [#tpu.dimension_semantics<parallel>, #tpu.dimension_semantics<parallel>, #tpu.dimension_semantics<arbitrary>], iteration_bounds = array<i64: 1, 1, 5>, scalar_prefetch = 0 : i64, scratch_operands = 1 : i64, tpu.core_type = #tpu.core_type<tc>, window_params = [{transform_indices = @transform_0, window_bounds = array<i64: 64, 128>}, {transform_indices = @transform_1, window_bounds = array<i64: 128, 128>}, {transform_indices = @transform_2, window_bounds = array<i64: 64, 1>}, {transform_indices = @transform_3, window_bounds = array<i64: 64, 128>}]} {
    %c0_i32 = arith.constant 0 : i32
    %0 = arith.cmpi eq, %arg2, %c0_i32 : i32
    %1 = arith.extui %0 : i1 to i32
    %c0_i32_0 = arith.constant 0 : i32
    %2 = arith.cmpi ne, %1, %c0_i32_0 : i32
    scf.if %2 {
      %cst_9 = arith.constant 0.000000e+00 : f32
      %12 = vector.broadcast %cst_9 : f32 to vector<64x128xf32>
      %c0_10 = arith.constant 0 : index
      %c0_11 = arith.constant 0 : index
      %13 = vector.load %arg7[%c0_10, %c0_11] : memref<64x128xf32, #tpu.memory_space<vmem>>, vector<64x128xf32>
      tpu.vector_store %arg7[%c0_10, %c0_11], %12 {strides = array<i32>} : memref<64x128xf32, #tpu.memory_space<vmem>>, vector<64x128xf32>,
    } else {
    }
    %c0 = arith.constant 0 : index
    %c0_1 = arith.constant 0 : index
    %3 = vector.load %arg7[%c0, %c0_1] : memref<64x128xf32, #tpu.memory_space<vmem>>, vector<64x128xf32>
    %c0_2 = arith.constant 0 : index
    %c0_3 = arith.constant 0 : index
    %4 = vector.load %arg3[%c0_2, %c0_3] : memref<64x128xf32, #tpu.memory_space<vmem>>, vector<64x128xf32>
    %c0_4 = arith.constant 0 : index
    %c0_5 = arith.constant 0 : index
    %5 = vector.load %arg4[%c0_4, %c0_5] : memref<128x128xf32, #tpu.memory_space<vmem>>, vector<128x128xf32>
    %cst = arith.constant dense<0.000000e+00> : vector<64x128xf32>
    %6 = tpu.matmul %4, %5, %cst {dimension_numbers = #tpu.dot_dimension_numbers<[1], [0], [0], [1], [0, 0, 1, 1], [], []>} : vector<64x128xf32>, vector<128x128xf32>, vector<64x128xf32> -> vector<64x128xf32>
    %7 = arith.addf %3, %6 : vector<64x128xf32>
    %c0_6 = arith.constant 0 : index
    %c0_7 = arith.constant 0 : index
    %8 = vector.load %arg7[%c0_6, %c0_7] : memref<64x128xf32, #tpu.memory_space<vmem>>, vector<64x128xf32>
    tpu.vector_store %arg7[%c0_6, %c0_7], %7 {strides = array<i32>} : memref<64x128xf32, #tpu.memory_space<vmem>>, vector<64x128xf32>,
    %c4_i32 = arith.constant 4 : i32
    %9 = arith.cmpi eq, %arg2, %c4_i32 : i32
    %10 = arith.extui %9 : i1 to i32
    %c0_i32_8 = arith.constant 0 : i32
    %11 = arith.cmpi ne, %10, %c0_i32_8 : i32
    scf.if %11 {
      %c0_9 = arith.constant 0 : index
      %c0_10 = arith.constant 0 : index
      %12 = vector.load %arg7[%c0_9, %c0_10] : memref<64x128xf32, #tpu.memory_space<vmem>>, vector<64x128xf32>
      %c0_11 = arith.constant 0 : index
      %c0_12 = arith.constant 0 : index
      %13 = vector.load %arg5[%c0_11, %c0_12] : memref<64x1xf32, #tpu.memory_space<vmem>>, vector<64x1xf32>
      %14 = vector.broadcast %13 : vector<64x1xf32> to vector<64x128xf32>
      %15 = arith.addf %12, %14 : vector<64x128xf32>
      %cst_13 = arith.constant 0.000000e+00 : f32
      %16 = vector.broadcast %cst_13 : f32 to vector<64x128xf32>
      %17 = arith.maximumf %15, %16 : vector<64x128xf32>
      %c0_14 = arith.constant 0 : index
      %c0_15 = arith.constant 0 : index
      %18 = vector.load %arg6[%c0_14, %c0_15] : memref<64x128xf32, #tpu.memory_space<vmem>>, vector<64x128xf32>
      tpu.vector_store %arg6[%c0_14, %c0_15], %17 {strides = array<i32>} : memref<64x128xf32, #tpu.memory_space<vmem>>, vector<64x128xf32>,
    } else {
    }
    return
  }
  func.func @transform_0(%arg0: i32, %arg1: i32, %arg2: i32) -> (i32, i32) {
    %c0_i32 = arith.constant 0 : i32
    return %arg0, %arg2 : i32, i32
  }
  func.func @transform_1(%arg0: i32, %arg1: i32, %arg2: i32) -> (i32, i32) {
    %c0_i32 = arith.constant 0 : i32
    return %arg2, %arg1 : i32, i32
  }
  func.func @transform_2(%arg0: i32, %arg1: i32, %arg2: i32) -> (i32, i32) {
    %c0_i32 = arith.constant 0 : i32
    %c0_i32_0 = arith.constant 0 : i32
    return %arg0, %c0_i32 : i32, i32
  }
  func.func @transform_3(%arg0: i32, %arg1: i32, %arg2: i32) -> (i32, i32) {
    %c0_i32 = arith.constant 0 : i32
    return %arg0, %arg1 : i32, i32
  }
}

module attributes {stable_mosaic.version = 11 : i64} {
  func.func @_matmul_bias_kernel(%arg0: i32, %arg1: i32, %arg2: i32, %arg3: memref<256x128xf32, #tpu.memory_space<vmem>>, %arg4: memref<128x128xf32, #tpu.memory_space<vmem>>, %arg5: memref<256x1xf32, #tpu.memory_space<vmem>>, %arg6: memref<256x128xf32, #tpu.memory_space<vmem>>, %arg7: memref<256x128xf32, #tpu.memory_space<vmem>>) attributes {dimension_semantics = [#tpu.dimension_semantics<parallel>, #tpu.dimension_semantics<parallel>, #tpu.dimension_semantics<arbitrary>], iteration_bounds = array<i64: 2, 1, 1>, scalar_prefetch = 0 : i64, scratch_operands = 1 : i64, tpu.core_type = #tpu.core_type<tc>, window_params = [{transform_indices = @transform_0, window_bounds = array<i64: 256, 128>}, {transform_indices = @transform_1, window_bounds = array<i64: 128, 128>}, {transform_indices = @transform_2, window_bounds = array<i64: 256, 1>}, {transform_indices = @transform_3, window_bounds = array<i64: 256, 128>}]} {
    %c0_i32 = arith.constant 0 : i32
    %0 = arith.cmpi eq, %arg2, %c0_i32 : i32
    %1 = arith.extui %0 : i1 to i32
    %c0_i32_0 = arith.constant 0 : i32
    %2 = arith.cmpi ne, %1, %c0_i32_0 : i32
    scf.if %2 {
      %cst_10 = arith.constant 0.000000e+00 : f32
      %12 = vector.broadcast %cst_10 : f32 to vector<256x128xf32>
      %c0_11 = arith.constant 0 : index
      %c0_12 = arith.constant 0 : index
      %13 = vector.load %arg7[%c0_11, %c0_12] : memref<256x128xf32, #tpu.memory_space<vmem>>, vector<256x128xf32>
      tpu.vector_store %arg7[%c0_11, %c0_12], %12 {strides = array<i32>} : memref<256x128xf32, #tpu.memory_space<vmem>>, vector<256x128xf32>,
    } else {
    }
    %c0 = arith.constant 0 : index
    %c0_1 = arith.constant 0 : index
    %3 = vector.load %arg7[%c0, %c0_1] : memref<256x128xf32, #tpu.memory_space<vmem>>, vector<256x128xf32>
    %c0_2 = arith.constant 0 : index
    %c0_3 = arith.constant 0 : index
    %4 = vector.load %arg3[%c0_2, %c0_3] : memref<256x128xf32, #tpu.memory_space<vmem>>, vector<256x128xf32>
    %c0_4 = arith.constant 0 : index
    %c0_5 = arith.constant 0 : index
    %5 = vector.load %arg4[%c0_4, %c0_5] : memref<128x128xf32, #tpu.memory_space<vmem>>, vector<128x128xf32>
    %cst = arith.constant dense<0.000000e+00> : vector<256x128xf32>
    %6 = tpu.matmul %4, %5, %cst {dimension_numbers = #tpu.dot_dimension_numbers<[1], [0], [0], [1], [0, 0, 1, 1], [], []>} : vector<256x128xf32>, vector<128x128xf32>, vector<256x128xf32> -> vector<256x128xf32>
    %7 = arith.addf %3, %6 : vector<256x128xf32>
    %c0_6 = arith.constant 0 : index
    %c0_7 = arith.constant 0 : index
    %8 = vector.load %arg7[%c0_6, %c0_7] : memref<256x128xf32, #tpu.memory_space<vmem>>, vector<256x128xf32>
    tpu.vector_store %arg7[%c0_6, %c0_7], %7 {strides = array<i32>} : memref<256x128xf32, #tpu.memory_space<vmem>>, vector<256x128xf32>,
    %c0_i32_8 = arith.constant 0 : i32
    %9 = arith.cmpi eq, %arg2, %c0_i32_8 : i32
    %10 = arith.extui %9 : i1 to i32
    %c0_i32_9 = arith.constant 0 : i32
    %11 = arith.cmpi ne, %10, %c0_i32_9 : i32
    scf.if %11 {
      %c0_10 = arith.constant 0 : index
      %c0_11 = arith.constant 0 : index
      %12 = vector.load %arg7[%c0_10, %c0_11] : memref<256x128xf32, #tpu.memory_space<vmem>>, vector<256x128xf32>
      %c0_12 = arith.constant 0 : index
      %c0_13 = arith.constant 0 : index
      %13 = vector.load %arg5[%c0_12, %c0_13] : memref<256x1xf32, #tpu.memory_space<vmem>>, vector<256x1xf32>
      %14 = vector.broadcast %13 : vector<256x1xf32> to vector<256x128xf32>
      %15 = arith.addf %12, %14 : vector<256x128xf32>
      %c0_14 = arith.constant 0 : index
      %c0_15 = arith.constant 0 : index
      %16 = vector.load %arg6[%c0_14, %c0_15] : memref<256x128xf32, #tpu.memory_space<vmem>>, vector<256x128xf32>
      tpu.vector_store %arg6[%c0_14, %c0_15], %15 {strides = array<i32>} : memref<256x128xf32, #tpu.memory_space<vmem>>, vector<256x128xf32>,
    } else {
    }
    return
  }
  func.func @transform_0(%arg0: i32, %arg1: i32, %arg2: i32) -> (i32, i32) {
    %c0_i32 = arith.constant 0 : i32
    return %arg0, %arg2 : i32, i32
  }
  func.func @transform_1(%arg0: i32, %arg1: i32, %arg2: i32) -> (i32, i32) {
    %c0_i32 = arith.constant 0 : i32
    return %arg2, %arg1 : i32, i32
  }
  func.func @transform_2(%arg0: i32, %arg1: i32, %arg2: i32) -> (i32, i32) {
    %c0_i32 = arith.constant 0 : i32
    %c0_i32_0 = arith.constant 0 : i32
    return %arg0, %c0_i32 : i32, i32
  }
  func.func @transform_3(%arg0: i32, %arg1: i32, %arg2: i32) -> (i32, i32) {
    %c0_i32 = arith.constant 0 : i32
    return %arg0, %arg1 : i32, i32
  }
}

</mosaic_0001>

<bundles_post_ra>
// kernel: nature_cnn_forward.4
= control target key start
LH: loop header
LB: loop body
LE: loop exit
PB: predicated region body
PF: predicated region fallthrough
CT: control target
= control target key end

     0   :  { %v285_v3 = vmov 0   ;;  %s450_s1 = inlined_call_operand.vmem [shape: f32[256,128], index: 1, kind: input, shape index: {}]   ;;  %s451_s0 = inlined_call_operand.vmem [shape: f32[32,256], index: 0, kind: input, shape index: {}]   ;;  %s452_s2 = inlined_call_operand.vmem [shape: f32[32,1], index: 2, kind: input, shape index: {}]   ;;  %s453_s3 = inlined_call_operand.vmem [shape: f32[32,128], index: 3, kind: output, shape index: {}]  }
   0x1   :  { %v65_v0 = vld [vmem:[%s450_s1 + $0xf8] sm:$0xff]  ;;  %v64_v2 = vld [vmem:[%s450_s1 + $0xf0] sm:$0xff]  ;;  %284 = vset.pattern.permute.xlu1 %v285_v3  ;;  %283 = vset.pattern.permute.xlu0 %v285_v3  ;;  %v63_v5 = vld [vmem:[%s450_s1 + $0xe8] sm:$0xff] }
   0x2   :  { %v49_v1 = vld [vmem:[%s450_s1 + $0x78] sm:$0xff]  ;;  %206 = vmatprep.subr.mxu0 %v65_v0  ;;  %250 = vmatprep.subr.mxu1 %v65_v0  ;;  %v48_v4 = vld [vmem:[%s450_s1 + $0x70] sm:$0xff]  ;;  %v47_v6 = vld [vmem:[%s450_s1 + $0x68] sm:$0xff] }
   0x3   :  { %207 = vmatpush3.msra.mxu0 %v49_v1  ;;  %266 = vmatpush3.msra.mxu1 %v49_v1  ;;  %v62_v7 = vld [vmem:[%s450_s1 + $0xe0] sm:$0xff]  ;;  %v61_v9 = vld [vmem:[%s450_s1 + $0xd8] sm:$0xff]  ;;  %v60_v11 = vld [vmem:[%s450_s1 + $0xd0] sm:$0xff] }
   0x4   :  { %208 = vmatprep.subr.mxu0 %v64_v2  ;;  %251 = vmatprep.subr.mxu1 %v64_v2  ;;  %v46_v8 = vld [vmem:[%s450_s1 + $0x60] sm:$0xff]  ;;  %v45_v10 = vld [vmem:[%s450_s1 + $0x58] sm:$0xff]  ;;  %v44_v12 = vld [vmem:[%s450_s1 + $0x50] sm:$0xff] }
   0x5   :  { %209 = vmatpush3.msra.mxu0 %v48_v4  ;;  %267 = vmatpush3.msra.mxu1 %v48_v4  ;;  %v59_v13 = vld [vmem:[%s450_s1 + $0xc8] sm:$0xff]  ;;  %v58_v15 = vld [vmem:[%s450_s1 + $0xc0] sm:$0xff]  ;;  %v57_v17 = vld [vmem:[%s450_s1 + $0xb8] sm:$0xff] }
   0x6   :  { %210 = vmatprep.subr.mxu0 %v63_v5  ;;  %252 = vmatprep.subr.mxu1 %v63_v5  ;;  %v43_v14 = vld [vmem:[%s450_s1 + $0x48] sm:$0xff]  ;;  %v42_v16 = vld [vmem:[%s450_s1 + $0x40] sm:$0xff]  ;;  %v41_v18 = vld [vmem:[%s450_s1 + $0x38] sm:$0xff] }
   0x7   :  { %211 = vmatpush3.msra.mxu0 %v47_v6  ;;  %268 = vmatpush3.msra.mxu1 %v47_v6  ;;  %v56_v19 = vld [vmem:[%s450_s1 + $0xb0] sm:$0xff]  ;;  %v55_v21 = vld [vmem:[%s450_s1 + $0xa8] sm:$0xff]  ;;  %v54_v23 = vld [vmem:[%s450_s1 + $0xa0] sm:$0xff] }
   0x8   :  { %212 = vmatprep.subr.mxu0 %v62_v7  ;;  %253 = vmatprep.subr.mxu1 %v62_v7  ;;  %v40_v20 = vld [vmem:[%s450_s1 + $0x30] sm:$0xff]  ;;  %v39_v22 = vld [vmem:[%s450_s1 + $0x28] sm:$0xff]  ;;  %v38_v24 = vld [vmem:[%s450_s1 + $0x20] sm:$0xff] }
   0x9   :  { %213 = vmatpush3.msra.mxu0 %v46_v8  ;;  %269 = vmatpush3.msra.mxu1 %v46_v8  ;;  %v53_v25 = vld [vmem:[%s450_s1 + $0x98] sm:$0xff]  ;;  %v52_v27 = vld [vmem:[%s450_s1 + $0x90] sm:$0xff]  ;;  %v51_v29 = vld [vmem:[%s450_s1 + $0x88] sm:$0xff] }
   0xa   :  { %214 = vmatprep.subr.mxu0 %v61_v9  ;;  %254 = vmatprep.subr.mxu1 %v61_v9  ;;  %v37_v26 = vld [vmem:[%s450_s1 + $0x18] sm:$0xff]  ;;  %v36_v28 = vld [vmem:[%s450_s1 + $0x10] sm:$0xff]  ;;  %v35_v30 = vld [vmem:[%s450_s1 + $0x8] sm:$0xff] }
   0xb   :  { %215 = vmatpush3.msra.mxu0 %v45_v10  ;;  %270 = vmatpush3.msra.mxu1 %v45_v10  ;;  %v50_v31 = vld [vmem:[%s450_s1 + $0x80] sm:$0xff]  ;;  %v27_v33 = vld [vmem:[%s451_s0 + $0x8] sm:$0xff]  ;;  %v29_v37 = vld [vmem:[%s451_s0 + $0x18] sm:$0xff] }
   0xc   :  { %216 = vmatprep.subr.mxu0 %v60_v11  ;;  %255 = vmatprep.subr.mxu1 %v60_v11  ;;  %v34_v32 = vld [vmem:[%s450_s1] sm:$0xff]  ;;  %v31_v34 = vld [vmem:[%s451_s0 + $0x28] sm:$0xff]  ;;  %v33_v38 = vld [vmem:[%s451_s0 + $0x38] sm:$0xff] }
   0xd   :  { %217 = vmatpush3.msra.mxu0 %v44_v12  ;;  %271 = vmatpush3.msra.mxu1 %v44_v12  ;;  %v26_v35 = vld [vmem:[%s451_s0] sm:$0xff]  ;;  %v168_v39 = vld [vmem:[%s452_s2 + $0x10] sm:$0xff]  ;;  %v169_v43 = vld [vmem:[%s452_s2 + $0x18] sm:$0xff] }
   0xe   :  { %218 = vmatprep.subr.mxu0 %v59_v13  ;;  %256 = vmatprep.subr.mxu1 %v59_v13  ;;  %v30_v36 = vld [vmem:[%s451_s0 + $0x20] sm:$0xff]  ;;  %v28_v41 = vld [vmem:[%s451_s0 + $0x10] sm:$0xff]  ;;  %v167_v44 = vld [vmem:[%s452_s2 + $0x8] sm:$0xff] }
   0xf   :  { %219 = vmatpush3.msra.mxu0 %v43_v14  ;;  %272 = vmatpush3.msra.mxu1 %v43_v14  ;;  %v166_v40 = vld [vmem:[%s452_s2] sm:$0xff]  ;;  %v32_v42 = vld [vmem:[%s451_s0 + $0x30] sm:$0xff] }
  0x10   :  { %220 = vmatprep.subr.mxu0 %v58_v15  ;;  %257 = vmatprep.subr.mxu1 %v58_v15 }
  0x11   :  { %221 = vmatpush3.msra.mxu0 %v42_v16  ;;  %273 = vmatpush3.msra.mxu1 %v42_v16 }
  0x12   :  { %222 = vmatprep.subr.mxu0 %v57_v17  ;;  %258 = vmatprep.subr.mxu1 %v57_v17 }
  0x13   :  { %223 = vmatpush3.msra.mxu0 %v41_v18  ;;  %274 = vmatpush3.msra.mxu1 %v41_v18 }
  0x14   :  { %224 = vmatprep.subr.mxu0 %v56_v19  ;;  %259 = vmatprep.subr.mxu1 %v56_v19 }
  0x15   :  { %225 = vmatpush3.msra.mxu0 %v40_v20  ;;  %275 = vmatpush3.msra.mxu1 %v40_v20 }
  0x16   :  { %226 = vmatprep.subr.mxu0 %v55_v21  ;;  %260 = vmatprep.subr.mxu1 %v55_v21 }
  0x17   :  { %227 = vmatpush3.msra.mxu0 %v39_v22  ;;  %276 = vmatpush3.msra.mxu1 %v39_v22 }
  0x18   :  { %228 = vmatprep.subr.mxu0 %v54_v23  ;;  %261 = vmatprep.subr.mxu1 %v54_v23 }
  0x19   :  { %229 = vmatpush3.msra.mxu0 %v38_v24  ;;  %277 = vmatpush3.msra.mxu1 %v38_v24 }
  0x1a   :  { %230 = vmatprep.subr.mxu0 %v53_v25  ;;  %262 = vmatprep.subr.mxu1 %v53_v25 }
  0x1b   :  { %231 = vmatpush3.msra.mxu0 %v37_v26  ;;  %278 = vmatpush3.msra.mxu1 %v37_v26 }
  0x1c   :  { %232 = vmatprep.subr.mxu0 %v52_v27  ;;  %263 = vmatprep.subr.mxu1 %v52_v27 }
  0x1d   :  { %233 = vmatpush3.msra.mxu0 %v36_v28  ;;  %279 = vmatpush3.msra.mxu1 %v36_v28 }
  0x1e   :  { %234 = vmatprep.subr.mxu0 %v51_v29  ;;  %264 = vmatprep.subr.mxu1 %v51_v29 }
  0x1f   :  { %235 = vmatpush3.msra.mxu0 %v35_v30  ;;  %280 = vmatpush3.msra.mxu1 %v35_v30 }
  0x20   :  { %236 = vmatprep.subr.mxu0 %v50_v31  ;;  %265 = vmatprep.subr.mxu1 %v50_v31 }
  0x21   :  { %237 = vmatpush3.msra.mxu0 %v34_v32  ;;  %281 = vmatpush3.msra.mxu1 %v34_v32 }
  0x22   :  { %130 = vmatprep.mubr.f32.mxu0 %v27_v33  ;;  %140 = vmatprep.mubr.f32.mxu1 %v31_v34 }
  0x23   :  { %131 = vmatmul.mubr.f32.vlgmr.msra.gmra.mxu0 %v26_v35  ;;  %141 = vmatmul.mubr.f32.vlgmr.msra.gmra.mxu1 %v30_v36 }
  0x24   :  { %135 = vmatprep.mubr.f32.mxu0 %v29_v37  ;;  %145 = vmatprep.mubr.f32.mxu1 %v33_v38 }
  0x25   :  { %182 = vperm.xlu1 %284, %v168_v39   ;;  %172 = vperm.xlu0 %283, %v166_v40  }
  0x27   :  { %136 = vmatmul.mubr.f32.gmra.mxu0 %v28_v41  ;;  %146 = vmatmul.mubr.f32.gmra.mxu1 %v32_v42 }
  0x29   :  { %187 = vperm.xlu1 %284, %v169_v43   ;;  %177 = vperm.xlu0 %283, %v167_v44  }
  0xa0   :  { %v183_v47 = vpop.permute.xlu1 %182  ;;  %v173_v48 = vpop.permute.xlu0 %172 }
  0xa4   :  { %v188_v63 = vpop.permute.xlu1 %187  ;;  %v178_v0 = vpop.permute.xlu0 %177 }
  0xe3   :  { %v238_v45 = vpop.f32.mrf.mxu0  ;;  %v244_v46 = vpop.f32.mrf.mxu1 }
  0xe5   :  { %v239_v49 = vpop.f32.mrf.mxu0  ;;  %v245_v50 = vpop.f32.mrf.mxu1 }
  0xe6   :  { %v240_v51 = vadd.f32 %v239_v49, %v238_v45  ;;  %v246_v52 = vadd.f32 %v245_v50, %v244_v46 }
  0xe7   :  { %v241_v53 = vpop.f32.mrf.mxu0  ;;  %v247_v54 = vpop.f32.mrf.mxu1 }
  0xe8   :  { %v190_v55 = vadd.f32 %v240_v51, %v173_v48  ;;  %v192_v56 = vadd.f32 %v246_v52, %v183_v47 }
  0xe9   :  { %v242_v57 = vpop.f32.mrf.mxu0  ;;  %v248_v58 = vpop.f32.mrf.mxu1 }
  0xea   :  { %v194_v59 = vmax.f32 %v190_v55, 0.0  ;;  %v196_v60 = vmax.f32 %v192_v56, 0.0  ;;  %v243_v61 = vadd.f32 %v242_v57, %v241_v53  ;;  %v249_v62 = vadd.f32 %v248_v58, %v247_v54 }
  0xec   :  { %198 = vst [vmem:[%s453_s3] sm:$0xff] %v194_v59  ;;  %200 = vst [vmem:[%s453_s3 + $0x10] sm:$0xff] %v196_v60  ;;  %v191_v1 = vadd.f32 %v243_v61, %v178_v0  ;;  %v193_v2 = vadd.f32 %v249_v62, %v188_v63 }
  0xee   :  { %v195_v3 = vmax.f32 %v191_v1, 0.0  ;;  %v197_v4 = vmax.f32 %v193_v2, 0.0 }
  0xf0   :  { %199 = vst [vmem:[%s453_s3 + $0x8] sm:$0xff] %v195_v3  ;;  %201 = vst [vmem:[%s453_s3 + $0x18] sm:$0xff] %v197_v4 }

// kernel: nature_cnn_forward.5
= control target key start
LH: loop header
LB: loop body
LE: loop exit
PB: predicated region body
PF: predicated region fallthrough
CT: control target
= control target key end

     0   :  { %v558_v3 = vmov 0   ;;  %s915_s1 = inlined_call_operand.vmem [shape: f32[512,128], index: 1, kind: input, shape index: {}]   ;;  %s916_s0 = inlined_call_operand.vmem [shape: f32[64,512], index: 0, kind: input, shape index: {}]   ;;  %s917_s2 = inlined_call_operand.vmem [shape: f32[64,1], index: 2, kind: input, shape index: {}]   ;;  %s918_s3 = inlined_call_operand.vmem [shape: f32[64,128], index: 3, kind: output, shape index: {}]  }
   0x1   :  { %v97_v0 = vld [vmem:[%s915_s1 + $0xf8] sm:$0xff]  ;;  %556 = vset.pattern.permute.xlu0 %v558_v3  ;;  %557 = vset.pattern.permute.xlu1 %v558_v3  ;;  %v96_v5 = vld [vmem:[%s915_s1 + $0xf0] sm:$0xff]  ;;  %v95_v9 = vld [vmem:[%s915_s1 + $0xe8] sm:$0xff] }
   0x2   :  { %v129_v1 = vld [vmem:[%s915_s1 + $0x1f8] sm:$0xff]  ;;  %443 = vmatprep.subr.mxu0 %v97_v0  ;;  %v128_v6 = vld [vmem:[%s915_s1 + $0x1f0] sm:$0xff]  ;;  %v127_v10 = vld [vmem:[%s915_s1 + $0x1e8] sm:$0xff] }
   0x3   :  { %v81_v2 = vld [vmem:[%s915_s1 + $0x78] sm:$0xff]  ;;  %499 = vmatprep.subr.mxu1 %v129_v1  ;;  %v80_v7 = vld [vmem:[%s915_s1 + $0x70] sm:$0xff]  ;;  %v79_v11 = vld [vmem:[%s915_s1 + $0x68] sm:$0xff] }
   0x4   :  { %v113_v4 = vld [vmem:[%s915_s1 + $0x178] sm:$0xff]  ;;  %444 = vmatpush3.msra.mxu0 %v81_v2  ;;  %v112_v8 = vld [vmem:[%s915_s1 + $0x170] sm:$0xff]  ;;  %v111_v12 = vld [vmem:[%s915_s1 + $0x168] sm:$0xff] }
   0x5   :  { %500 = vmatpush3.msra.mxu1 %v113_v4  ;;  %445 = vmatprep.subr.mxu0 %v96_v5  ;;  %v94_v13 = vld [vmem:[%s915_s1 + $0xe0] sm:$0xff]  ;;  %v93_v17 = vld [vmem:[%s915_s1 + $0xd8] sm:$0xff]  ;;  %v92_v21 = vld [vmem:[%s915_s1 + $0xd0] sm:$0xff] }
   0x6   :  { %501 = vmatprep.subr.mxu1 %v128_v6  ;;  %446 = vmatpush3.msra.mxu0 %v80_v7  ;;  %v126_v14 = vld [vmem:[%s915_s1 + $0x1e0] sm:$0xff]  ;;  %v125_v18 = vld [vmem:[%s915_s1 + $0x1d8] sm:$0xff]  ;;  %v124_v22 = vld [vmem:[%s915_s1 + $0x1d0] sm:$0xff] }
   0x7   :  { %502 = vmatpush3.msra.mxu1 %v112_v8  ;;  %447 = vmatprep.subr.mxu0 %v95_v9  ;;  %v78_v15 = vld [vmem:[%s915_s1 + $0x60] sm:$0xff]  ;;  %v77_v19 = vld [vmem:[%s915_s1 + $0x58] sm:$0xff]  ;;  %v76_v23 = vld [vmem:[%s915_s1 + $0x50] sm:$0xff] }
   0x8   :  { %503 = vmatprep.subr.mxu1 %v127_v10  ;;  %v110_v16 = vld [vmem:[%s915_s1 + $0x160] sm:$0xff]  ;;  %448 = vmatpush3.msra.mxu0 %v79_v11  ;;  %v109_v20 = vld [vmem:[%s915_s1 + $0x158] sm:$0xff]  ;;  %v108_v24 = vld [vmem:[%s915_s1 + $0x150] sm:$0xff] }
   0x9   :  { %504 = vmatpush3.msra.mxu1 %v111_v12  ;;  %449 = vmatprep.subr.mxu0 %v94_v13  ;;  %v91_v25 = vld [vmem:[%s915_s1 + $0xc8] sm:$0xff]  ;;  %v90_v29 = vld [vmem:[%s915_s1 + $0xc0] sm:$0xff]  ;;  %v89_v33 = vld [vmem:[%s915_s1 + $0xb8] sm:$0xff] }
   0xa   :  { %505 = vmatprep.subr.mxu1 %v126_v14  ;;  %450 = vmatpush3.msra.mxu0 %v78_v15  ;;  %v123_v26 = vld [vmem:[%s915_s1 + $0x1c8] sm:$0xff]  ;;  %v122_v30 = vld [vmem:[%s915_s1 + $0x1c0] sm:$0xff]  ;;  %v121_v34 = vld [vmem:[%s915_s1 + $0x1b8] sm:$0xff] }
   0xb   :  { %506 = vmatpush3.msra.mxu1 %v110_v16  ;;  %451 = vmatprep.subr.mxu0 %v93_v17  ;;  %v75_v27 = vld [vmem:[%s915_s1 + $0x48] sm:$0xff]  ;;  %v74_v31 = vld [vmem:[%s915_s1 + $0x40] sm:$0xff]  ;;  %v73_v35 = vld [vmem:[%s915_s1 + $0x38] sm:$0xff] }
   0xc   :  { %507 = vmatprep.subr.mxu1 %v125_v18  ;;  %452 = vmatpush3.msra.mxu0 %v77_v19  ;;  %v107_v28 = vld [vmem:[%s915_s1 + $0x148] sm:$0xff]  ;;  %v106_v32 = vld [vmem:[%s915_s1 + $0x140] sm:$0xff]  ;;  %v105_v36 = vld [vmem:[%s915_s1 + $0x138] sm:$0xff] }
   0xd   :  { %508 = vmatpush3.msra.mxu1 %v109_v20  ;;  %453 = vmatprep.subr.mxu0 %v92_v21  ;;  %v88_v37 = vld [vmem:[%s915_s1 + $0xb0] sm:$0xff]  ;;  %v87_v41 = vld [vmem:[%s915_s1 + $0xa8] sm:$0xff]  ;;  %v86_v45 = vld [vmem:[%s915_s1 + $0xa0] sm:$0xff] }
   0xe   :  { %509 = vmatprep.subr.mxu1 %v124_v22  ;;  %454 = vmatpush3.msra.mxu0 %v76_v23  ;;  %v120_v38 = vld [vmem:[%s915_s1 + $0x1b0] sm:$0xff]  ;;  %v119_v42 = vld [vmem:[%s915_s1 + $0x1a8] sm:$0xff]  ;;  %v118_v46 = vld [vmem:[%s915_s1 + $0x1a0] sm:$0xff] }
   0xf   :  { %510 = vmatpush3.msra.mxu1 %v108_v24  ;;  %455 = vmatprep.subr.mxu0 %v91_v25  ;;  %v72_v39 = vld [vmem:[%s915_s1 + $0x30] sm:$0xff]  ;;  %v71_v43 = vld [vmem:[%s915_s1 + $0x28] sm:$0xff]  ;;  %v70_v47 = vld [vmem:[%s915_s1 + $0x20] sm:$0xff] }
  0x10   :  { %511 = vmatprep.subr.mxu1 %v123_v26  ;;  %456 = vmatpush3.msra.mxu0 %v75_v27  ;;  %v104_v40 = vld [vmem:[%s915_s1 + $0x130] sm:$0xff]  ;;  %v103_v44 = vld [vmem:[%s915_s1 + $0x128] sm:$0xff]  ;;  %v102_v48 = vld [vmem:[%s915_s1 + $0x120] sm:$0xff] }
  0x11   :  { %512 = vmatpush3.msra.mxu1 %v107_v28  ;;  %457 = vmatprep.subr.mxu0 %v90_v29  ;;  %v85_v49 = vld [vmem:[%s915_s1 + $0x98] sm:$0xff]  ;;  %v84_v53 = vld [vmem:[%s915_s1 + $0x90] sm:$0xff]  ;;  %v83_v57 = vld [vmem:[%s915_s1 + $0x88] sm:$0xff] }
  0x12   :  { %513 = vmatprep.subr.mxu1 %v122_v30  ;;  %458 = vmatpush3.msra.mxu0 %v74_v31  ;;  %v117_v50 = vld [vmem:[%s915_s1 + $0x198] sm:$0xff]  ;;  %v116_v54 = vld [vmem:[%s915_s1 + $0x190] sm:$0xff]  ;;  %v115_v58 = vld [vmem:[%s915_s1 + $0x188] sm:$0xff] }
  0x13   :  { %514 = vmatpush3.msra.mxu1 %v106_v32  ;;  %459 = vmatprep.subr.mxu0 %v89_v33  ;;  %v69_v51 = vld [vmem:[%s915_s1 + $0x18] sm:$0xff]  ;;  %v68_v55 = vld [vmem:[%s915_s1 + $0x10] sm:$0xff]  ;;  %v67_v59 = vld [vmem:[%s915_s1 + $0x8] sm:$0xff] }
  0x14   :  { %515 = vmatprep.subr.mxu1 %v121_v34  ;;  %460 = vmatpush3.msra.mxu0 %v73_v35  ;;  %v101_v52 = vld [vmem:[%s915_s1 + $0x118] sm:$0xff]  ;;  %v100_v56 = vld [vmem:[%s915_s1 + $0x110] sm:$0xff]  ;;  %v99_v60 = vld [vmem:[%s915_s1 + $0x108] sm:$0xff] }
  0x15   :  { %516 = vmatpush3.msra.mxu1 %v105_v36  ;;  %461 = vmatprep.subr.mxu0 %v88_v37  ;;  %v82_v61 = vld [vmem:[%s915_s1 + $0x80] sm:$0xff]  ;;  %v35_v0 = vld [vmem:[%s916_s0 + $0x8] sm:$0xff]  ;;  %v37_v2 = vld [vmem:[%s916_s0 + $0x18] sm:$0xff] }
  0x16   :  { %517 = vmatprep.subr.mxu1 %v120_v38  ;;  %462 = vmatpush3.msra.mxu0 %v72_v39  ;;  %v114_v62 = vld [vmem:[%s915_s1 + $0x180] sm:$0xff]  ;;  %v36_v4 = vld [vmem:[%s916_s0 + $0x10] sm:$0xff]  ;;  %v39_v5 = vld [vmem:[%s916_s0 + $0x28] sm:$0xff] }
  0x17   :  { %518 = vmatpush3.msra.mxu1 %v104_v40  ;;  %463 = vmatprep.subr.mxu0 %v87_v41  ;;  %v66_v63 = vld [vmem:[%s915_s1] sm:$0xff]  ;;  %v41_v6 = vld [vmem:[%s916_s0 + $0x38] sm:$0xff]  ;;  %v369_v8 = vld [vmem:[%s917_s2 + $0x10] sm:$0xff] }
  0x18   :  { %519 = vmatprep.subr.mxu1 %v119_v42  ;;  %464 = vmatpush3.msra.mxu0 %v71_v43  ;;  %v98_v1 = vld [vmem:[%s915_s1 + $0x100] sm:$0xff]  ;;  %v40_v10 = vld [vmem:[%s916_s0 + $0x30] sm:$0xff]  ;;  %v43_v11 = vld [vmem:[%s916_s0 + $0x48] sm:$0xff] }
  0x19   :  { %520 = vmatpush3.msra.mxu1 %v103_v44  ;;  %465 = vmatprep.subr.mxu0 %v86_v45  ;;  %v34_v3 = vld [vmem:[%s916_s0] sm:$0xff]  ;;  %v45_v12 = vld [vmem:[%s916_s0 + $0x58] sm:$0xff]  ;;  %v368_v13 = vld [vmem:[%s917_s2 + $0x8] sm:$0xff] }
  0x1a   :  { %521 = vmatprep.subr.mxu1 %v118_v46  ;;  %466 = vmatpush3.msra.mxu0 %v70_v47  ;;  %v367_v7 = vld [vmem:[%s917_s2] sm:$0xff]  ;;  %v370_v14 = vld [vmem:[%s917_s2 + $0x18] sm:$0xff]  ;;  %v44_v16 = vld [vmem:[%s916_s0 + $0x50] sm:$0xff] }
  0x1b   :  { %522 = vmatpush3.msra.mxu1 %v102_v48  ;;  %467 = vmatprep.subr.mxu0 %v85_v49  ;;  %v38_v9 = vld [vmem:[%s916_s0 + $0x20] sm:$0xff]  ;;  %v47_v17 = vld [vmem:[%s916_s0 + $0x68] sm:$0xff]  ;;  %v49_v18 = vld [vmem:[%s916_s0 + $0x78] sm:$0xff] }
  0x1c   :  { %523 = vmatprep.subr.mxu1 %v117_v50  ;;  %468 = vmatpush3.msra.mxu0 %v69_v51  ;;  %v42_v15 = vld [vmem:[%s916_s0 + $0x40] sm:$0xff]  ;;  %v372_v19 = vld [vmem:[%s917_s2 + $0x28] sm:$0xff]  ;;  %v48_v22 = vld [vmem:[%s916_s0 + $0x70] sm:$0xff] }
  0x1d   :  { %524 = vmatpush3.msra.mxu1 %v101_v52  ;;  %469 = vmatprep.subr.mxu0 %v84_v53  ;;  %v371_v20 = vld [vmem:[%s917_s2 + $0x20] sm:$0xff]  ;;  %v51_v23 = vld [vmem:[%s916_s0 + $0x88] sm:$0xff]  ;;  %v53_v24 = vld [vmem:[%s916_s0 + $0x98] sm:$0xff] }
  0x1e   :  { %525 = vmatprep.subr.mxu1 %v116_v54  ;;  %470 = vmatpush3.msra.mxu0 %v68_v55  ;;  %v46_v21 = vld [vmem:[%s916_s0 + $0x60] sm:$0xff]  ;;  %v374_v25 = vld [vmem:[%s917_s2 + $0x38] sm:$0xff]  ;;  %v373_v26 = vld [vmem:[%s917_s2 + $0x30] sm:$0xff] }
  0x1f   :  { %526 = vmatpush3.msra.mxu1 %v100_v56  ;;  %471 = vmatprep.subr.mxu0 %v83_v57  ;;  %v50_v27 = vld [vmem:[%s916_s0 + $0x80] sm:$0xff]  ;;  %v52_v28 = vld [vmem:[%s916_s0 + $0x90] sm:$0xff]  ;;  %v55_v29 = vld [vmem:[%s916_s0 + $0xa8] sm:$0xff] }
  0x20   :  { %527 = vmatprep.subr.mxu1 %v115_v58  ;;  %472 = vmatpush3.msra.mxu0 %v67_v59  ;;  %v57_v30 = vld [vmem:[%s916_s0 + $0xb8] sm:$0xff]  ;;  %v54_v31 = vld [vmem:[%s916_s0 + $0xa0] sm:$0xff]  ;;  %v56_v32 = vld [vmem:[%s916_s0 + $0xb0] sm:$0xff] }
  0x21   :  { %528 = vmatpush3.msra.mxu1 %v99_v60  ;;  %473 = vmatprep.subr.mxu0 %v82_v61  ;;  %v59_v33 = vld [vmem:[%s916_s0 + $0xc8] sm:$0xff]  ;;  %v61_v34 = vld [vmem:[%s916_s0 + $0xd8] sm:$0xff]  ;;  %v58_v35 = vld [vmem:[%s916_s0 + $0xc0] sm:$0xff] }
  0x22   :  { %529 = vmatprep.subr.mxu1 %v114_v62  ;;  %474 = vmatpush3.msra.mxu0 %v66_v63  ;;  %v60_v36 = vld [vmem:[%s916_s0 + $0xd0] sm:$0xff]  ;;  %v63_v37 = vld [vmem:[%s916_s0 + $0xe8] sm:$0xff]  ;;  %v65_v38 = vld [vmem:[%s916_s0 + $0xf8] sm:$0xff] }
  0x23   :  { %194 = vmatprep.mubr.f32.mxu0 %v35_v0  ;;  %530 = vmatpush3.msra.mxu1 %v98_v1  ;;  %v62_v39 = vld [vmem:[%s916_s0 + $0xe0] sm:$0xff]  ;;  %v64_v40 = vld [vmem:[%s916_s0 + $0xf0] sm:$0xff] }
  0x24   :  { %299 = vmatprep.mubr.f32.mxu1 %v37_v2  ;;  %195 = vmatmul.mubr.f32.vlgmr.msra.gmra.mxu0 %v34_v3 }
  0x25   :  { %300 = vmatmul.mubr.f32.vlgmr.msra.gmra.mxu1 %v36_v4  ;;  %199 = vmatprep.mubr.f32.mxu0 %v39_v5 }
  0x26   :  { %304 = vmatprep.mubr.f32.mxu1 %v41_v6  ;;  %377 = vperm.xlu0 %556, %v367_v7  }
  0x27   :  { %387 = vperm.xlu1 %557, %v369_v8  }
  0x28   :  { %200 = vmatmul.mubr.f32.gmra.mxu0 %v38_v9 }
  0x29   :  { %305 = vmatmul.mubr.f32.gmra.mxu1 %v40_v10  ;;  %204 = vmatprep.mubr.f32.mxu0 %v43_v11 }
  0x2a   :  { %309 = vmatprep.mubr.f32.mxu1 %v45_v12  ;;  %382 = vperm.xlu0 %556, %v368_v13  }
  0x2b   :  { %392 = vperm.xlu1 %557, %v370_v14  }
  0x2c   :  { %205 = vmatmul.mubr.f32.gmra.mxu0 %v42_v15 }
  0x2d   :  { %310 = vmatmul.mubr.f32.gmra.mxu1 %v44_v16  ;;  %209 = vmatprep.mubr.f32.mxu0 %v47_v17 }
  0x2e   :  { %314 = vmatprep.mubr.f32.mxu1 %v49_v18  ;;  %397 = vperm.xlu0 %556, %v371_v20  }
  0x2f   :  { %402 = vperm.xlu1 %557, %v372_v19  }
  0x30   :  { %210 = vmatmul.mubr.f32.gmra.mxu0 %v46_v21 }
  0x31   :  { %315 = vmatmul.mubr.f32.gmra.mxu1 %v48_v22  ;;  %214 = vmatprep.mubr.f32.mxu0 %v51_v23 }
  0x32   :  { %319 = vmatprep.mubr.f32.mxu1 %v53_v24  ;;  %407 = vperm.xlu0 %556, %v373_v26  }
  0x33   :  { %412 = vperm.xlu1 %557, %v374_v25  }
  0x34   :  { %215 = vmatmul.mubr.f32.gmra.mxu0 %v50_v27 }
  0x35   :  { %320 = vmatmul.mubr.f32.gmra.mxu1 %v52_v28  ;;  %219 = vmatprep.mubr.f32.mxu0 %v55_v29 }
  0x36   :  { %324 = vmatprep.mubr.f32.mxu1 %v57_v30 }
  0x38   :  { %220 = vmatmul.mubr.f32.gmra.mxu0 %v54_v31 }
  0x39   :  { %325 = vmatmul.mubr.f32.gmra.mxu1 %v56_v32  ;;  %224 = vmatprep.mubr.f32.mxu0 %v59_v33 }
  0x3a   :  { %329 = vmatprep.mubr.f32.mxu1 %v61_v34 }
  0x3c   :  { %225 = vmatmul.mubr.f32.gmra.mxu0 %v58_v35 }
  0x3d   :  { %330 = vmatmul.mubr.f32.gmra.mxu1 %v60_v36  ;;  %229 = vmatprep.mubr.f32.mxu0 %v63_v37 }
  0x3e   :  { %334 = vmatprep.mubr.f32.mxu1 %v65_v38 }
  0x40   :  { %230 = vmatmul.mubr.f32.gmra.mxu0 %v62_v39 }
  0x41   :  { %335 = vmatmul.mubr.f32.gmra.mxu1 %v64_v40 }
  0xa1   :  { %v378_v43 = vpop.permute.xlu0 %377 }
  0xa2   :  { %v388_v63 = vpop.permute.xlu1 %387 }
  0xa5   :  { %v383_v56 = vpop.permute.xlu0 %382 }
  0xa6   :  { %v393_v15 = vpop.permute.xlu1 %392 }
  0xa9   :  { %v398_v25 = vpop.permute.xlu0 %397 }
  0xaa   :  { %v403_v34 = vpop.permute.xlu1 %402 }
  0xe4   :  { %v475_v41 = vpop.f32.mrf.mxu0 }
  0xe5   :  { %v531_v42 = vpop.f32.mrf.mxu1 }
  0xe6   :  { %v476_v44 = vpop.f32.mrf.mxu0 }
  0xe7   :  { %v532_v45 = vpop.f32.mrf.mxu1  ;;  %v477_v46 = vadd.f32 %v476_v44, %v475_v41  ;;  %v408_v44 = vpop.permute.xlu0 %407 }
  0xe8   :  { %v533_v47 = vadd.f32 %v532_v45, %v531_v42  ;;  %v478_v48 = vpop.f32.mrf.mxu0 }
  0xe9   :  { %v534_v49 = vpop.f32.mrf.mxu1 }
  0xea   :  { %v302_v50 = vadd.f32 %v533_v47, %v477_v46  ;;  %v479_v51 = vpop.f32.mrf.mxu0 }
  0xeb   :  { %v535_v52 = vpop.f32.mrf.mxu1  ;;  %v480_v54 = vadd.f32 %v479_v51, %v478_v48 }
  0xec   :  { %v415_v53 = vadd.f32 %v378_v43, %v302_v50  ;;  %v536_v55 = vadd.f32 %v535_v52, %v534_v49  ;;  %v481_v57 = vpop.f32.mrf.mxu0 }
  0xed   :  { %v537_v58 = vpop.f32.mrf.mxu1 }
  0xee   :  { %v423_v59 = vmax.f32 %v415_v53, 0.0  ;;  %v307_v60 = vadd.f32 %v536_v55, %v480_v54  ;;  %v482_v61 = vpop.f32.mrf.mxu0  ;;  %v413_v54 = vpop.permute.xlu1 %412 }
  0xef   :  { %v538_v62 = vpop.f32.mrf.mxu1  ;;  %v483_v1 = vadd.f32 %v482_v61, %v481_v57 }
  0xf0   :  { %431 = vst [vmem:[%s918_s3] sm:$0xff] %v423_v59  ;;  %v416_v0 = vadd.f32 %v383_v56, %v307_v60  ;;  %v539_v2 = vadd.f32 %v538_v62, %v537_v58  ;;  %v484_v3 = vpop.f32.mrf.mxu0 }
  0xf1   :  { %v540_v4 = vpop.f32.mrf.mxu1 }
  0xf2   :  { %v424_v5 = vmax.f32 %v416_v0, 0.0  ;;  %v312_v6 = vadd.f32 %v539_v2, %v483_v1  ;;  %v485_v7 = vpop.f32.mrf.mxu0 }
  0xf3   :  { %v541_v8 = vpop.f32.mrf.mxu1  ;;  %v486_v10 = vadd.f32 %v485_v7, %v484_v3 }
  0xf4   :  { %432 = vst [vmem:[%s918_s3 + $0x8] sm:$0xff] %v424_v5  ;;  %v417_v9 = vadd.f32 %v388_v63, %v312_v6  ;;  %v542_v11 = vadd.f32 %v541_v8, %v540_v4  ;;  %v487_v12 = vpop.f32.mrf.mxu0 }
  0xf5   :  { %v543_v13 = vpop.f32.mrf.mxu1 }
  0xf6   :  { %v425_v14 = vmax.f32 %v417_v9, 0.0  ;;  %v317_v16 = vadd.f32 %v542_v11, %v486_v10  ;;  %v488_v17 = vpop.f32.mrf.mxu0 }
  0xf7   :  { %v544_v18 = vpop.f32.mrf.mxu1  ;;  %v489_v20 = vadd.f32 %v488_v17, %v487_v12 }
  0xf8   :  { %433 = vst [vmem:[%s918_s3 + $0x10] sm:$0xff] %v425_v14  ;;  %v418_v19 = vadd.f32 %v393_v15, %v317_v16  ;;  %v545_v21 = vadd.f32 %v544_v18, %v543_v13  ;;  %v490_v22 = vpop.f32.mrf.mxu0 }
  0xf9   :  { %v546_v23 = vpop.f32.mrf.mxu1 }
  0xfa   :  { %v426_v24 = vmax.f32 %v418_v19, 0.0  ;;  %v322_v26 = vadd.f32 %v545_v21, %v489_v20  ;;  %v491_v27 = vpop.f32.mrf.mxu0 }
  0xfb   :  { %v547_v28 = vpop.f32.mrf.mxu1  ;;  %v492_v30 = vadd.f32 %v491_v27, %v490_v22 }
  0xfc   :  { %434 = vst [vmem:[%s918_s3 + $0x18] sm:$0xff] %v426_v24  ;;  %v419_v29 = vadd.f32 %v398_v25, %v322_v26  ;;  %v548_v31 = vadd.f32 %v547_v28, %v546_v23  ;;  %v493_v32 = vpop.f32.mrf.mxu0 }
  0xfd   :  { %v549_v33 = vpop.f32.mrf.mxu1 }
  0xfe   :  { %v427_v35 = vmax.f32 %v419_v29, 0.0  ;;  %v327_v36 = vadd.f32 %v548_v31, %v492_v30  ;;  %v494_v37 = vpop.f32.mrf.mxu0 }
  0xff   :  { %v550_v38 = vpop.f32.mrf.mxu1  ;;  %v495_v40 = vadd.f32 %v494_v37, %v493_v32 }
 0x100   :  { %435 = vst [vmem:[%s918_s3 + $0x20] sm:$0xff] %v427_v35  ;;  %v420_v39 = vadd.f32 %v403_v34, %v327_v36  ;;  %v551_v41 = vadd.f32 %v550_v38, %v549_v33  ;;  %v496_v42 = vpop.f32.mrf.mxu0 }
 0x101   :  { %v552_v43 = vpop.f32.mrf.mxu1 }
 0x102   :  { %v428_v45 = vmax.f32 %v420_v39, 0.0  ;;  %v332_v46 = vadd.f32 %v551_v41, %v495_v40  ;;  %v497_v47 = vpop.f32.mrf.mxu0 }
 0x103   :  { %v553_v48 = vpop.f32.mrf.mxu1  ;;  %v498_v50 = vadd.f32 %v497_v47, %v496_v42 }
 0x104   :  { %436 = vst [vmem:[%s918_s3 + $0x28] sm:$0xff] %v428_v45  ;;  %v421_v49 = vadd.f32 %v408_v44, %v332_v46  ;;  %v554_v51 = vadd.f32 %v553_v48, %v552_v43 }
 0x106   :  { %v429_v52 = vmax.f32 %v421_v49, 0.0  ;;  %v337_v53 = vadd.f32 %v554_v51, %v498_v50 }
 0x108   :  { %437 = vst [vmem:[%s918_s3 + $0x30] sm:$0xff] %v429_v52  ;;  %v422_v55 = vadd.f32 %v413_v54, %v337_v53 }
 0x10a   :  { %v430_v56 = vmax.f32 %v422_v55, 0.0 }
 0x10c   :  { %438 = vst [vmem:[%s918_s3 + $0x38] sm:$0xff] %v430_v56 }

// kernel: nature_cnn_forward.6
= control target key start
LH: loop header
LB: loop body
LE: loop exit
PB: predicated region body
PF: predicated region fallthrough
CT: control target
= control target key end

     0   :  { %s907_s12 = smov 0   ;;  %s909_s13 = smov 0   ;;  %s1050_s0 = inlined_call_operand.vmem [shape: f32[64,640], index: 0, kind: input, shape index: {}]   ;;  %s1051_s1 = inlined_call_operand.vmem [shape: f32[640,128], index: 1, kind: input, shape index: {}]   ;;  %s1052_s2 = inlined_call_operand.vmem [shape: f32[64,1], index: 2, kind: input, shape index: {}]   ;;  %s1053_s3 = inlined_call_operand.vmem [shape: f32[64,128], index: 3, kind: output, shape index: {}]  }
   0x1   :  { %s911_s14 = smov 0   ;;  %s913_s15 = smov 0  }
   0x2   :  { %s915_s16 = smov 0  }
   0x3 LB: > { %s25_s17 = sadd.s32 1, %s879_s15  ;;  %p48_p1 = scmp.ne.s32.totalorder %s871_s13, %s867_s12  ;;  %s883_s16 = sphi %s915_s16, %s13_s16   ;;  %s879_s15 = sphi %s913_s15, %s1057_s15   ;;  %s875_s14 = sphi %s911_s14, %s1056_s14   ;;  %s871_s13 = sphi %s909_s13, %s1055_s13   ;;  %s867_s12 = sphi %s907_s12, %s1054_s12  }
   0x4   : > { %p26_p0 = scmp.ge.s32.totalorder %s25_s17, 5  ;;  %p49_p2 = scmp.eq.s32.totalorder %s883_s16, 0 }
   0x5   : > { %s41_s19 = sadd.s32 1, %s871_s13  ;;  %p688_p5 = scmp.ge.s32.totalorder %s883_s16, 5 }
   0x6   : > { %s1059_s17 = smov (%p26_p0, %s25_s17), 0  ;;  %p50_p3 = por %p49_p2, %p48_p1 }
   0x7   : > { %s37_s18 = ssub.s32 %s879_s15, %s1059_s17  ;;  %165 = sbr.rel (%p688_p5) target bundleno = 20 (0x14), region = 20 }
   0x8   : > { %p39_p4 = scmp.eq.s32.totalorder %s37_s18, 0 }
   0xa   : > { %s942_s20 = scalar_select %p39_p4, %s871_s13, %s41_s19  }
   0xc   : > { %168 = sbr.rel (!%p50_p3) target bundleno = 20 (0x14), region = 24  ;;  %s170_s21 = sand.u32 (%p50_p3), 1, %s871_s13  }
   0xd   : > { %s690_s22 = sshll.u32 (%p50_p3), %s879_s15, 3  ;;  %s689_s23 = sshll.u32 (%p50_p3), %s170_s21, 6 }
   0xe   : > { %s177_s26 = scalar_lea.vmem (%p50_p3), %s1050_s0, %s690_s22  ;;  %s172_s27 = scalar_lea.vmem (%p50_p3), [#allocation3], %s689_s23 }
   0xf   : > { %v220_v0 = vld [vmem:[%s177_s26] sm:$0xff] (%p50_p3)  ;;  %v222_v1 = vld [vmem:[%s177_s26 + $0x28] sm:$0xff] (%p50_p3)  ;;  %v224_v2 = vld [vmem:[%s177_s26 + $0x50] sm:$0xff] (%p50_p3) }
  0x10   : > { %221 = vst [vmem:[%s172_s27] sm:$0xff] (%p50_p3), %v220_v0  ;;  %223 = vst [vmem:[%s172_s27 + $0x8] sm:$0xff] (%p50_p3), %v222_v1  ;;  %v226_v3 = vld [vmem:[%s177_s26 + $0x78] sm:$0xff] (%p50_p3)  ;;  %v228_v4 = vld [vmem:[%s177_s26 + $0xa0] sm:$0xff] (%p50_p3) }
  0x11   : > { %225 = vst [vmem:[%s172_s27 + $0x10] sm:$0xff] %v224_v2  ;;  %v230_v5 = vld [vmem:[%s177_s26 + $0xc8] sm:$0xff]  ;;  %227 = vst [vmem:[%s172_s27 + $0x18] sm:$0xff] %v226_v3  ;;  %v232_v6 = vld [vmem:[%s177_s26 + $0xf0] sm:$0xff] }
  0x12   : > { %229 = vst [vmem:[%s172_s27 + $0x20] sm:$0xff] %v228_v4  ;;  %231 = vst [vmem:[%s172_s27 + $0x28] sm:$0xff] %v230_v5  ;;  %v234_v7 = vld [vmem:[%s177_s26 + $0x118] sm:$0xff] }
  0x13   : > { %233 = vst [vmem:[%s172_s27 + $0x30] sm:$0xff] %v232_v6  ;;  %235 = vst [vmem:[%s172_s27 + $0x38] sm:$0xff] %v234_v7 }
  0x14 PF: > { %p691_p6 = scmp.ge.s32.totalorder %s883_s16, 1  ;;  %p252_p7 = scmp.lt.s32.totalorder %s883_s16, 6 }
  0x16   : > { %p253_p8 = pnand %p691_p6, %p252_p7 }
  0x17   : > { %s259_s28 = sand.u32 (!%p253_p8), 1, %s867_s12   ;;  %s693_s29 = sshll.u32 (!%p253_p8), %s875_s14, 4 }
  0x18   : > { %256 = sbr.rel (%p253_p8) target bundleno = 418 (0x1a2), region = 66  ;;  %s692_s30 = sshll.u32 (!%p253_p8), %s259_s28, 6 }
  0x19   : > { %p300_p9 = scmp.lt.s32.totalorder (!%p253_p8), %s693_s29, 79  ;;  %s959_s8 = scalar_lea.vmem (!%p253_p8), [#allocation3], %s692_s30 }
  0x1a   : > { %p695_p10 = scmp.ne.s32.totalorder (!%p253_p8), %s875_s14, 0 }
  0x1d   : > { %s1061_s29 = smov (!%p300_p9, %s693_s29), 79  ;;  %326 = sbr.rel (%p695_p10) target bundleno = 39 (0x27), region = 74 }
  0x1e   : > { %s694_s4 = sshll.u32 %s1061_s29, 3 }
  0x1f   : > { %s957_s7 = scalar_lea.vmem %s1051_s1, %s694_s4 }
  0x22   : > { %v885_v8 = vmov 0.0  }
  0x23   : > { %327 = vst [vmem:[#allocation2 + $0x30] sm:$0xff] %v885_v8  ;;  %328 = vst [vmem:[#allocation2] sm:$0xff] %v885_v8 }
  0x24   : > { %329 = vst [vmem:[#allocation2 + $0x18] sm:$0xff] %v885_v8  ;;  %330 = vst [vmem:[#allocation2 + $0x10] sm:$0xff] %v885_v8 }
  0x25   : > { %331 = vst [vmem:[#allocation2 + $0x8] sm:$0xff] %v885_v8  ;;  %332 = vst [vmem:[#allocation2 + $0x20] sm:$0xff] %v885_v8 }
  0x26   : > { %333 = vst [vmem:[#allocation2 + $0x28] sm:$0xff] %v885_v8  ;;  %334 = vst [vmem:[#allocation2 + $0x38] sm:$0xff] %v885_v8 }
  0x27 PF: > { %v366_v9 = vld [vmem:[%s957_s7 + $0x78] sm:$0xff]  ;;  %v365_v10 = vld [vmem:[%s957_s7 + $0x70] sm:$0xff]  ;;  %v364_v11 = vld [vmem:[%s957_s7 + $0x68] sm:$0xff]  ;;  %p696_p11 = scmp.ne.s32.totalorder %s875_s14, 4 }
  0x28   : > { %725 = vmatprep.subr.mxu0 %v366_v9  ;;  %769 = vmatprep.subr.mxu1 %v366_v9  ;;  %v363_v12 = vld [vmem:[%s957_s7 + $0x60] sm:$0xff]  ;;  %v362_v13 = vld [vmem:[%s957_s7 + $0x58] sm:$0xff]  ;;  %v361_v14 = vld [vmem:[%s957_s7 + $0x50] sm:$0xff] }
  0x29   : > { %726 = vmatpush3.msra.mxu0 %v366_v9  ;;  %785 = vmatpush3.msra.mxu1 %v366_v9  ;;  %v360_v15 = vld [vmem:[%s957_s7 + $0x48] sm:$0xff]  ;;  %v359_v16 = vld [vmem:[%s957_s7 + $0x40] sm:$0xff]  ;;  %v358_v17 = vld [vmem:[%s957_s7 + $0x38] sm:$0xff] }
  0x2a   : > { %727 = vmatprep.subr.mxu0 %v365_v10  ;;  %770 = vmatprep.subr.mxu1 %v365_v10  ;;  %v357_v18 = vld [vmem:[%s957_s7 + $0x30] sm:$0xff]  ;;  %v356_v19 = vld [vmem:[%s957_s7 + $0x28] sm:$0xff]  ;;  %v355_v20 = vld [vmem:[%s957_s7 + $0x20] sm:$0xff] }
  0x2b   : > { %728 = vmatpush3.msra.mxu0 %v365_v10  ;;  %786 = vmatpush3.msra.mxu1 %v365_v10  ;;  %v354_v21 = vld [vmem:[%s957_s7 + $0x18] sm:$0xff]  ;;  %v353_v22 = vld [vmem:[%s957_s7 + $0x10] sm:$0xff]  ;;  %v352_v23 = vld [vmem:[%s957_s7 + $0x8] sm:$0xff] }
  0x2c   : > { %729 = vmatprep.subr.mxu0 %v364_v11  ;;  %771 = vmatprep.subr.mxu1 %v364_v11  ;;  %v351_v24 = vld [vmem:[%s957_s7] sm:$0xff]  ;;  %v344_v27 = vld [vmem:[%s959_s8 + $0x8] sm:$0xff]  ;;  %v345_v29 = vld [vmem:[%s959_s8 + $0x10] sm:$0xff] }
  0x2d   : > { %730 = vmatpush3.msra.mxu0 %v364_v11  ;;  %787 = vmatpush3.msra.mxu1 %v364_v11  ;;  %v343_v25 = vld [vmem:[%s959_s8] sm:$0xff]  ;;  %v348_v28 = vld [vmem:[%s959_s8 + $0x28] sm:$0xff]  ;;  %v349_v30 = vld [vmem:[%s959_s8 + $0x30] sm:$0xff] }
  0x2e   : > { %731 = vmatprep.subr.mxu0 %v363_v12  ;;  %772 = vmatprep.subr.mxu1 %v363_v12  ;;  %v347_v26 = vld [vmem:[%s959_s8 + $0x20] sm:$0xff]  ;;  %v346_v31 = vld [vmem:[%s959_s8 + $0x18] sm:$0xff]  ;;  %v335_v37 = vld [vmem:[#allocation2 + $0x30] sm:$0xff] }
  0x2f   : > { %732 = vmatpush3.msra.mxu0 %v363_v12  ;;  %788 = vmatpush3.msra.mxu1 %v363_v12  ;;  %v350_v32 = vld [vmem:[%s959_s8 + $0x38] sm:$0xff]  ;;  %v336_v33 = vld [vmem:[#allocation2] sm:$0xff]  ;;  %v339_v38 = vld [vmem:[#allocation2 + $0x8] sm:$0xff] }
  0x30   : > { %733 = vmatprep.subr.mxu0 %v362_v13  ;;  %773 = vmatprep.subr.mxu1 %v362_v13  ;;  %v340_v34 = vld [vmem:[#allocation2 + $0x20] sm:$0xff]  ;;  %v338_v43 = vld [vmem:[#allocation2 + $0x10] sm:$0xff]  ;;  %v342_v44 = vld [vmem:[#allocation2 + $0x38] sm:$0xff] }
  0x31   : > { %734 = vmatpush3.msra.mxu0 %v362_v13  ;;  %789 = vmatpush3.msra.mxu1 %v362_v13  ;;  %v337_v49 = vld [vmem:[#allocation2 + $0x18] sm:$0xff]  ;;  %v341_v50 = vld [vmem:[#allocation2 + $0x28] sm:$0xff] }
  0x32   : > { %735 = vmatprep.subr.mxu0 %v361_v14  ;;  %774 = vmatprep.subr.mxu1 %v361_v14 }
  0x33   : > { %736 = vmatpush3.msra.mxu0 %v361_v14  ;;  %790 = vmatpush3.msra.mxu1 %v361_v14 }
  0x34   : > { %737 = vmatprep.subr.mxu0 %v360_v15  ;;  %775 = vmatprep.subr.mxu1 %v360_v15 }
  0x35   : > { %738 = vmatpush3.msra.mxu0 %v360_v15  ;;  %791 = vmatpush3.msra.mxu1 %v360_v15 }
  0x36   : > { %739 = vmatprep.subr.mxu0 %v359_v16  ;;  %776 = vmatprep.subr.mxu1 %v359_v16 }
  0x37   : > { %740 = vmatpush3.msra.mxu0 %v359_v16  ;;  %792 = vmatpush3.msra.mxu1 %v359_v16 }
  0x38   : > { %741 = vmatprep.subr.mxu0 %v358_v17  ;;  %777 = vmatprep.subr.mxu1 %v358_v17 }
  0x39   : > { %742 = vmatpush3.msra.mxu0 %v358_v17  ;;  %793 = vmatpush3.msra.mxu1 %v358_v17 }
  0x3a   : > { %743 = vmatprep.subr.mxu0 %v357_v18  ;;  %778 = vmatprep.subr.mxu1 %v357_v18 }
  0x3b   : > { %744 = vmatpush3.msra.mxu0 %v357_v18  ;;  %794 = vmatpush3.msra.mxu1 %v357_v18 }
  0x3c   : > { %745 = vmatprep.subr.mxu0 %v356_v19  ;;  %779 = vmatprep.subr.mxu1 %v356_v19 }
  0x3d   : > { %746 = vmatpush3.msra.mxu0 %v356_v19  ;;  %795 = vmatpush3.msra.mxu1 %v356_v19 }
  0x3e   : > { %747 = vmatprep.subr.mxu0 %v355_v20  ;;  %780 = vmatprep.subr.mxu1 %v355_v20 }
  0x3f   : > { %748 = vmatpush3.msra.mxu0 %v355_v20  ;;  %796 = vmatpush3.msra.mxu1 %v355_v20 }
  0x40   : > { %749 = vmatprep.subr.mxu0 %v354_v21  ;;  %781 = vmatprep.subr.mxu1 %v354_v21 }
  0x41   : > { %750 = vmatpush3.msra.mxu0 %v354_v21  ;;  %797 = vmatpush3.msra.mxu1 %v354_v21 }
  0x42   : > { %751 = vmatprep.subr.mxu0 %v353_v22  ;;  %782 = vmatprep.subr.mxu1 %v353_v22 }
  0x43   : > { %752 = vmatpush3.msra.mxu0 %v353_v22  ;;  %798 = vmatpush3.msra.mxu1 %v353_v22 }
  0x44   : > { %753 = vmatprep.subr.mxu0 %v352_v23  ;;  %783 = vmatprep.subr.mxu1 %v352_v23 }
  0x45   : > { %754 = vmatpush3.msra.mxu0 %v352_v23  ;;  %799 = vmatpush3.msra.mxu1 %v352_v23 }
  0x46   : > { %755 = vmatprep.subr.mxu0 %v351_v24  ;;  %784 = vmatprep.subr.mxu1 %v351_v24 }
  0x47   : > { %756 = vmatpush3.msra.mxu0 %v351_v24  ;;  %800 = vmatpush3.msra.mxu1 %v351_v24 }
  0x48   : > { %757 = vmatprep.mubr.f32.mxu0 %v343_v25  ;;  %763 = vmatprep.mubr.f32.mxu1 %v347_v26 }
  0x49   : > { %758 = vmatmul.mubr.f32.vlgmr.msra.gmra.mxu0 %v344_v27  ;;  %764 = vmatmul.mubr.f32.vlgmr.msra.gmra.mxu1 %v348_v28 }
  0x4a   : > { %760 = vmatprep.mubr.f32.mxu0 %v345_v29  ;;  %766 = vmatprep.mubr.f32.mxu1 %v349_v30 }
  0x4d   : > { %761 = vmatmul.mubr.f32.gmra.mxu0 %v346_v31  ;;  %767 = vmatmul.mubr.f32.gmra.mxu1 %v350_v32 }
 0x109   : > { %v759_v35 = vpop.f32.mrf.mxu0  ;;  %v765_v36 = vpop.f32.mrf.mxu1 }
 0x10a   : > { %v473_v39 = vadd.f32 %v759_v35, %v336_v33  ;;  %v477_v40 = vadd.f32 %v765_v36, %v340_v34 }
 0x10b   : > { %v433_v41 = vpop.f32.mrf.mxu0  ;;  %v453_v42 = vpop.f32.mrf.mxu1 }
 0x10c   : > { %481 = vst [vmem:[#allocation2] sm:$0xff] %v473_v39  ;;  %485 = vst [vmem:[#allocation2 + $0x20] sm:$0xff] %v477_v40  ;;  %v472_v45 = vadd.f32 %v433_v41, %v335_v37  ;;  %v476_v46 = vadd.f32 %v453_v42, %v339_v38 }
 0x10d   : > { %v762_v47 = vpop.f32.mrf.mxu0  ;;  %v768_v48 = vpop.f32.mrf.mxu1 }
 0x10e   : > { %480 = vst [vmem:[#allocation2 + $0x30] sm:$0xff] %v472_v45  ;;  %484 = vst [vmem:[#allocation2 + $0x8] sm:$0xff] %v476_v46  ;;  %v475_v51 = vadd.f32 %v762_v47, %v338_v43  ;;  %v479_v52 = vadd.f32 %v768_v48, %v342_v44  ;;  %491 = sbr.rel (%p696_p11) target bundleno = 418 (0x1a2), region = 78 }
 0x10f   : > { %v443_v53 = vpop.f32.mrf.mxu0  ;;  %v463_v54 = vpop.f32.mrf.mxu1 }
 0x110   : > { %483 = vst [vmem:[#allocation2 + $0x10] sm:$0xff] %v475_v51  ;;  %487 = vst [vmem:[#allocation2 + $0x38] sm:$0xff] %v479_v52  ;;  %v474_v55 = vadd.f32 %v443_v53, %v337_v49  ;;  %v478_v56 = vadd.f32 %v463_v54, %v341_v50 }
 0x112   : > { %482 = vst [vmem:[#allocation2 + $0x18] sm:$0xff] %v474_v55  ;;  %486 = vst [vmem:[#allocation2 + $0x28] sm:$0xff] %v478_v56 }
 0x113   : > { %v502_v57 = vld [vmem:[%s1052_s2 + $0x10] sm:$0xff]  ;;  %v500_v58 = vld [vmem:[%s1052_s2] sm:$0xff]  ;;  %v886_v59 = vmov 0   ;;  %v503_v60 = vld [vmem:[%s1052_s2 + $0x18] sm:$0xff] }
 0x114   : > { %844 = vset.pattern.permute.xlu1 %v886_v59  ;;  %843 = vset.pattern.permute.xlu0 %v886_v59  ;;  %v501_v61 = vld [vmem:[%s1052_s2 + $0x8] sm:$0xff]  ;;  %v504_v63 = vld [vmem:[%s1052_s2 + $0x20] sm:$0xff]  ;;  %v507_v0 = vld [vmem:[%s1052_s2 + $0x38] sm:$0xff] }
 0x115   : > { %520 = vperm.xlu1 %844, %v502_v57   ;;  %510 = vperm.xlu0 %843, %v500_v58   ;;  %v505_v62 = vld [vmem:[%s1052_s2 + $0x28] sm:$0xff]  ;;  %v506_v1 = vld [vmem:[%s1052_s2 + $0x30] sm:$0xff]  ;;  %v493_v9 = vld [vmem:[#allocation2] sm:$0xff] }
 0x116   : > { %v492_v3 = vld [vmem:[#allocation2 + $0x30] sm:$0xff]  ;;  %v497_v16 = vld [vmem:[#allocation2 + $0x20] sm:$0xff]  ;;  %v496_v17 = vld [vmem:[#allocation2 + $0x8] sm:$0xff] }
 0x117   : > { %v495_v8 = vld [vmem:[#allocation2 + $0x10] sm:$0xff]  ;;  %v499_v24 = vld [vmem:[#allocation2 + $0x38] sm:$0xff] }
 0x119   : > { %525 = vperm.xlu1 %844, %v503_v60   ;;  %515 = vperm.xlu0 %843, %v501_v61   ;;  %v494_v2 = vld [vmem:[#allocation2 + $0x18] sm:$0xff]  ;;  %v498_v25 = vld [vmem:[#allocation2 + $0x28] sm:$0xff] }
 0x11d   : > { %535 = vperm.xlu1 %844, %v505_v62   ;;  %530 = vperm.xlu0 %843, %v504_v63  }
 0x121   : > { %545 = vperm.xlu1 %844, %v507_v0   ;;  %540 = vperm.xlu0 %843, %v506_v1  }
 0x190   : > { %v521_v4 = vpop.permute.xlu1 %520  ;;  %v511_v5 = vpop.permute.xlu0 %510 }
 0x191   : > { %v550_v6 = vadd.f32 %v521_v4, %v494_v2  ;;  %v548_v7 = vadd.f32 %v511_v5, %v492_v3 }
 0x193   : > { %v558_v10 = vmax.f32 %v550_v6, 0.0  ;;  %v556_v11 = vmax.f32 %v548_v7, 0.0 }
 0x194   : > { %v526_v12 = vpop.permute.xlu1 %525  ;;  %v516_v13 = vpop.permute.xlu0 %515 }
 0x195   : > { %566 = vst [vmem:[%s1053_s3 + $0x10] sm:$0xff] %v558_v10  ;;  %564 = vst [vmem:[%s1053_s3] sm:$0xff] %v556_v11  ;;  %v551_v14 = vadd.f32 %v526_v12, %v495_v8  ;;  %v549_v15 = vadd.f32 %v516_v13, %v493_v9 }
 0x197   : > { %v559_v18 = vmax.f32 %v551_v14, 0.0  ;;  %v557_v19 = vmax.f32 %v549_v15, 0.0 }
 0x198   : > { %v536_v20 = vpop.permute.xlu1 %535  ;;  %v531_v21 = vpop.permute.xlu0 %530 }
 0x199   : > { %567 = vst [vmem:[%s1053_s3 + $0x18] sm:$0xff] %v559_v18  ;;  %565 = vst [vmem:[%s1053_s3 + $0x8] sm:$0xff] %v557_v19  ;;  %v553_v22 = vadd.f32 %v536_v20, %v497_v16  ;;  %v552_v23 = vadd.f32 %v531_v21, %v496_v17 }
 0x19b   : > { %v561_v26 = vmax.f32 %v553_v22, 0.0  ;;  %v560_v27 = vmax.f32 %v552_v23, 0.0 }
 0x19c   : > { %v546_v28 = vpop.permute.xlu1 %545  ;;  %v541_v29 = vpop.permute.xlu0 %540 }
 0x19d   : > { %569 = vst [vmem:[%s1053_s3 + $0x28] sm:$0xff] %v561_v26  ;;  %568 = vst [vmem:[%s1053_s3 + $0x20] sm:$0xff] %v560_v27  ;;  %v555_v30 = vadd.f32 %v546_v28, %v499_v24  ;;  %v554_v31 = vadd.f32 %v541_v29, %v498_v25 }
 0x19f   : > { %v563_v32 = vmax.f32 %v555_v30, 0.0  ;;  %v562_v33 = vmax.f32 %v554_v31, 0.0 }
 0x1a1   : > { %571 = vst [vmem:[%s1053_s3 + $0x38] sm:$0xff] %v563_v32  ;;  %570 = vst [vmem:[%s1053_s3 + $0x30] sm:$0xff] %v562_v33 }
 0x1a2 PF: > { %s13_s16 = sadd.s32 1, %s883_s16   ;;  %s1054_s12 = smov %s871_s13 }
 0x1a3   : > { %p10_p12 = scmp.ge.s32.totalorder %s13_s16, 7   ;;  %s1055_s13 = smov %s942_s20 }
 0x1a4   : > { %s1056_s14 = smov %s879_s15  ;;  %s1057_s15 = smov %s1059_s17 }
 0x1a5   :  { %12 = sbr.rel (!%p10_p12) target bundleno = 3 (0x3), region = 119 }

// kernel: nature_cnn_forward.7
= control target key start
LH: loop header
LB: loop body
LE: loop exit
PB: predicated region body
PF: predicated region fallthrough
CT: control target
= control target key end

     0   :  { %s1320_s12 = smov 0   ;;  %s1322_s13 = smov 0   ;;  %s1538_s0 = inlined_call_operand.vmem [shape: f32[512,128], index: 0, kind: input, shape index: {}]   ;;  %s1539_s1 = inlined_call_operand.vmem [shape: f32[128,128], index: 1, kind: input, shape index: {}]   ;;  %s1540_s2 = inlined_call_operand.vmem [shape: f32[512,1], index: 2, kind: input, shape index: {}]   ;;  %s1541_s3 = inlined_call_operand.vmem [shape: f32[512,128], index: 3, kind: output, shape index: {}]  }
   0x1   :  { %s1324_s14 = smov 0  }
   0x2 LB: > { %s32_s15 = sadd.s32 1, %s1293_s13  ;;  %p1079_p0 = scmp.ge.s32.totalorder %s1297_s14, 1  ;;  %s1297_s14 = sphi %s1324_s14, %s13_s14   ;;  %s1293_s13 = sphi %s1322_s13, %s1543_s13   ;;  %s1289_s12 = sphi %s1320_s12, %s1542_s12  }
   0x3   : > { %p34_p1 = scmp.ge.s32.totalorder %s32_s15, 2  ;;  %p191_p2 = scmp.lt.s32.totalorder %s1297_s14, 3 }
   0x5   : > { %s1545_s15 = smov (%p34_p1, %s32_s15), 0  ;;  %p192_p3 = pnand %p1079_p0, %p191_p2 }
   0x6   : > { %s1080_s20 = sshll.u32 (!%p192_p3), %s1289_s12, 5 }
   0x7   : > { %195 = sbr.rel (%p192_p3) target bundleno = 279 (0x117), region = 32  ;;  %p235_p4 = scmp.lt.s32.totalorder (!%p192_p3), %s1080_s20, 63 }
   0xc   : > { %v382_v0 = vld [vmem:[%s1539_s1 + $0x78] sm:$0xff]  ;;  %v381_v1 = vld [vmem:[%s1539_s1 + $0x70] sm:$0xff]  ;;  %v380_v2 = vld [vmem:[%s1539_s1 + $0x68] sm:$0xff]  ;;  %s1547_s20 = smov (!%p235_p4, %s1080_s20), 63  ;;  %v1299_v6 = vmov 0  }
   0xd   : > { %1136 = vmatprep.subr.mxu0 %v382_v0  ;;  %1216 = vmatprep.subr.mxu1 %v382_v0  ;;  %v379_v3 = vld [vmem:[%s1539_s1 + $0x60] sm:$0xff]  ;;  %s1350_s25 = sshll.u32 %s1547_s20, 3  ;;  %v378_v4 = vld [vmem:[%s1539_s1 + $0x58] sm:$0xff]  ;;  %v377_v5 = vld [vmem:[%s1539_s1 + $0x50] sm:$0xff] }
   0xe   : > { %1137 = vmatpush3.msra.mxu0 %v382_v0  ;;  %1232 = vmatpush3.msra.mxu1 %v382_v0  ;;  %s1359_s30 = scalar_lea.vmem %s1540_s2, %s1350_s25  ;;  %v376_v9 = vld [vmem:[%s1539_s1 + $0x48] sm:$0xff]  ;;  %v375_v10 = vld [vmem:[%s1539_s1 + $0x40] sm:$0xff]  ;;  %v374_v13 = vld [vmem:[%s1539_s1 + $0x38] sm:$0xff]  ;;  %s1408_s6 = scalar_lea.vmem %s1538_s0, %s1350_s25 }
   0xf   : > { %1138 = vmatprep.subr.mxu0 %v381_v1  ;;  %1217 = vmatprep.subr.mxu1 %v381_v1  ;;  %v709_v7 = vld [vmem:[%s1359_s30 + $0x10] sm:$0xff]  ;;  %v707_v8 = vld [vmem:[%s1359_s30] sm:$0xff]  ;;  %v710_v11 = vld [vmem:[%s1359_s30 + $0x18] sm:$0xff]  ;;  %s1486_s8 = scalar_lea.vmem %s1541_s3, %s1350_s25 }
  0x10   : > { %1139 = vmatpush3.msra.mxu0 %v381_v1  ;;  %1233 = vmatpush3.msra.mxu1 %v381_v1  ;;  %v708_v12 = vld [vmem:[%s1359_s30 + $0x8] sm:$0xff]  ;;  %v373_v14 = vld [vmem:[%s1539_s1 + $0x30] sm:$0xff]  ;;  %v711_v16 = vld [vmem:[%s1359_s30 + $0x20] sm:$0xff] }
  0x11   : > { %1140 = vmatprep.subr.mxu0 %v380_v2  ;;  %1218 = vmatprep.subr.mxu1 %v380_v2  ;;  %v712_v15 = vld [vmem:[%s1359_s30 + $0x28] sm:$0xff]  ;;  %v371_v18 = vld [vmem:[%s1539_s1 + $0x20] sm:$0xff]  ;;  %v714_v19 = vld [vmem:[%s1359_s30 + $0x38] sm:$0xff] }
  0x12   : > { %1141 = vmatpush3.msra.mxu0 %v380_v2  ;;  %1234 = vmatpush3.msra.mxu1 %v380_v2  ;;  %v372_v17 = vld [vmem:[%s1539_s1 + $0x28] sm:$0xff]  ;;  %v713_v20 = vld [vmem:[%s1359_s30 + $0x30] sm:$0xff]  ;;  %v370_v21 = vld [vmem:[%s1539_s1 + $0x18] sm:$0xff] }
  0x13   : > { %1142 = vmatprep.subr.mxu0 %v379_v3  ;;  %1219 = vmatprep.subr.mxu1 %v379_v3  ;;  %v369_v22 = vld [vmem:[%s1539_s1 + $0x10] sm:$0xff]  ;;  %v716_v23 = vld [vmem:[%s1359_s30 + $0x48] sm:$0xff]  ;;  %v715_v24 = vld [vmem:[%s1359_s30 + $0x40] sm:$0xff] }
  0x14   : > { %1143 = vmatpush3.msra.mxu0 %v379_v3  ;;  %1235 = vmatpush3.msra.mxu1 %v379_v3  ;;  %v368_v25 = vld [vmem:[%s1539_s1 + $0x8] sm:$0xff]  ;;  %v367_v26 = vld [vmem:[%s1539_s1] sm:$0xff]  ;;  %v718_v27 = vld [vmem:[%s1359_s30 + $0x58] sm:$0xff] }
  0x15   : > { %1144 = vmatprep.subr.mxu0 %v378_v4  ;;  %1220 = vmatprep.subr.mxu1 %v378_v4  ;;  %v717_v28 = vld [vmem:[%s1359_s30 + $0x50] sm:$0xff]  ;;  %v335_v29 = vld [vmem:[%s1408_s6] sm:$0xff]  ;;  %v336_v31 = vld [vmem:[%s1408_s6 + $0x8] sm:$0xff] }
  0x16   : > { %1145 = vmatpush3.msra.mxu0 %v378_v4  ;;  %1236 = vmatpush3.msra.mxu1 %v378_v4  ;;  %v351_v30 = vld [vmem:[%s1408_s6 + $0x80] sm:$0xff]  ;;  %v352_v32 = vld [vmem:[%s1408_s6 + $0x88] sm:$0xff]  ;;  %v337_v33 = vld [vmem:[%s1408_s6 + $0x10] sm:$0xff] }
  0x17   : > { %1274 = vset.pattern.permute.xlu1 %v1299_v6  ;;  %1273 = vset.pattern.permute.xlu0 %v1299_v6  ;;  %v353_v34 = vld [vmem:[%s1408_s6 + $0x90] sm:$0xff]  ;;  %v720_v35 = vld [vmem:[%s1359_s30 + $0x68] sm:$0xff]  ;;  %v719_v36 = vld [vmem:[%s1359_s30 + $0x60] sm:$0xff] }
  0x18   : > { %1146 = vmatprep.subr.mxu0 %v377_v5  ;;  %1221 = vmatprep.subr.mxu1 %v377_v5  ;;  %v338_v37 = vld [vmem:[%s1408_s6 + $0x18] sm:$0xff]  ;;  %v339_v39 = vld [vmem:[%s1408_s6 + $0x20] sm:$0xff]  ;;  %v721_v42 = vld [vmem:[%s1359_s30 + $0x70] sm:$0xff] }
  0x19   : > { %1147 = vmatpush3.msra.mxu0 %v377_v5  ;;  %1237 = vmatpush3.msra.mxu1 %v377_v5  ;;  %v354_v38 = vld [vmem:[%s1408_s6 + $0x98] sm:$0xff]  ;;  %v355_v40 = vld [vmem:[%s1408_s6 + $0xa0] sm:$0xff]  ;;  %v340_v43 = vld [vmem:[%s1408_s6 + $0x28] sm:$0xff] }
  0x1a   : > { %751 = vperm.xlu1 %1274, %v709_v7   ;;  %741 = vperm.xlu0 %1273, %v707_v8   ;;  %v722_v41 = vld [vmem:[%s1359_s30 + $0x78] sm:$0xff]  ;;  %v356_v44 = vld [vmem:[%s1408_s6 + $0xa8] sm:$0xff]  ;;  %v341_v45 = vld [vmem:[%s1408_s6 + $0x30] sm:$0xff] }
  0x1b   : > { %1148 = vmatprep.subr.mxu0 %v376_v9  ;;  %1222 = vmatprep.subr.mxu1 %v376_v9  ;;  %v357_v46 = vld [vmem:[%s1408_s6 + $0xb0] sm:$0xff]  ;;  %v724_v47 = vld [vmem:[%s1359_s30 + $0x88] sm:$0xff]  ;;  %v723_v48 = vld [vmem:[%s1359_s30 + $0x80] sm:$0xff] }
  0x1c   : > { %1149 = vmatpush3.msra.mxu0 %v376_v9  ;;  %1238 = vmatpush3.msra.mxu1 %v376_v9  ;;  %v342_v49 = vld [vmem:[%s1408_s6 + $0x38] sm:$0xff]  ;;  %v343_v51 = vld [vmem:[%s1408_s6 + $0x40] sm:$0xff]  ;;  %v725_v54 = vld [vmem:[%s1359_s30 + $0x90] sm:$0xff] }
  0x1d   : > { %1150 = vmatprep.subr.mxu0 %v375_v10  ;;  %1223 = vmatprep.subr.mxu1 %v375_v10  ;;  %v358_v50 = vld [vmem:[%s1408_s6 + $0xb8] sm:$0xff]  ;;  %v359_v52 = vld [vmem:[%s1408_s6 + $0xc0] sm:$0xff]  ;;  %v344_v55 = vld [vmem:[%s1408_s6 + $0x48] sm:$0xff] }
  0x1e   : > { %1151 = vmatpush3.msra.mxu0 %v375_v10  ;;  %1239 = vmatpush3.msra.mxu1 %v375_v10  ;;  %v726_v53 = vld [vmem:[%s1359_s30 + $0x98] sm:$0xff]  ;;  %v360_v56 = vld [vmem:[%s1408_s6 + $0xc8] sm:$0xff]  ;;  %v345_v57 = vld [vmem:[%s1408_s6 + $0x50] sm:$0xff] }
  0x1f   : > { %756 = vperm.xlu1 %1274, %v710_v11   ;;  %746 = vperm.xlu0 %1273, %v708_v12   ;;  %v361_v58 = vld [vmem:[%s1408_s6 + $0xd0] sm:$0xff]  ;;  %v728_v59 = vld [vmem:[%s1359_s30 + $0xa8] sm:$0xff]  ;;  %v727_v60 = vld [vmem:[%s1359_s30 + $0xa0] sm:$0xff] }
  0x20   : > { %1152 = vmatprep.subr.mxu0 %v374_v13  ;;  %1224 = vmatprep.subr.mxu1 %v374_v13  ;;  %v346_v61 = vld [vmem:[%s1408_s6 + $0x58] sm:$0xff]  ;;  %v347_v63 = vld [vmem:[%s1408_s6 + $0x60] sm:$0xff]  ;;  %v729_v2 = vld [vmem:[%s1359_s30 + $0xb0] sm:$0xff] }
  0x21   : > { %1153 = vmatpush3.msra.mxu0 %v374_v13  ;;  %1240 = vmatpush3.msra.mxu1 %v374_v13  ;;  %v362_v62 = vld [vmem:[%s1408_s6 + $0xd8] sm:$0xff]  ;;  %v363_v0 = vld [vmem:[%s1408_s6 + $0xe0] sm:$0xff]  ;;  %v348_v3 = vld [vmem:[%s1408_s6 + $0x68] sm:$0xff] }
  0x22   : > { %1154 = vmatprep.subr.mxu0 %v373_v14  ;;  %1225 = vmatprep.subr.mxu1 %v373_v14  ;;  %v730_v1 = vld [vmem:[%s1359_s30 + $0xb8] sm:$0xff]  ;;  %v364_v4 = vld [vmem:[%s1408_s6 + $0xe8] sm:$0xff]  ;;  %v349_v5 = vld [vmem:[%s1408_s6 + $0x70] sm:$0xff] }
  0x23   : > { %1155 = vmatpush3.msra.mxu0 %v373_v14  ;;  %1241 = vmatpush3.msra.mxu1 %v373_v14  ;;  %v365_v6 = vld [vmem:[%s1408_s6 + $0xf0] sm:$0xff]  ;;  %v732_v7 = vld [vmem:[%s1359_s30 + $0xc8] sm:$0xff]  ;;  %v731_v8 = vld [vmem:[%s1359_s30 + $0xc0] sm:$0xff] }
  0x24   : > { %766 = vperm.xlu1 %1274, %v712_v15   ;;  %761 = vperm.xlu0 %1273, %v711_v16   ;;  %v350_v9 = vld [vmem:[%s1408_s6 + $0x78] sm:$0xff]  ;;  %v733_v12 = vld [vmem:[%s1359_s30 + $0xd0] sm:$0xff]  ;;  %v736_v13 = vld [vmem:[%s1359_s30 + $0xe8] sm:$0xff] }
  0x25   : > { %1156 = vmatprep.subr.mxu0 %v372_v17  ;;  %1226 = vmatprep.subr.mxu1 %v372_v17  ;;  %v366_v10 = vld [vmem:[%s1408_s6 + $0xf8] sm:$0xff]  ;;  %v735_v14 = vld [vmem:[%s1359_s30 + $0xe0] sm:$0xff]  ;;  %v737_v16 = vld [vmem:[%s1359_s30 + $0xf0] sm:$0xff] }
  0x26   : > { %1157 = vmatpush3.msra.mxu0 %v372_v17  ;;  %1242 = vmatpush3.msra.mxu1 %v372_v17  ;;  %v734_v11 = vld [vmem:[%s1359_s30 + $0xd8] sm:$0xff] }
  0x27   : > { %1158 = vmatprep.subr.mxu0 %v371_v18  ;;  %1227 = vmatprep.subr.mxu1 %v371_v18  ;;  %v738_v15 = vld [vmem:[%s1359_s30 + $0xf8] sm:$0xff] }
  0x28   : > { %1159 = vmatpush3.msra.mxu0 %v371_v18  ;;  %1243 = vmatpush3.msra.mxu1 %v371_v18 }
  0x29   : > { %776 = vperm.xlu1 %1274, %v714_v19   ;;  %771 = vperm.xlu0 %1273, %v713_v20  }
  0x2a   : > { %1160 = vmatprep.subr.mxu0 %v370_v21  ;;  %1228 = vmatprep.subr.mxu1 %v370_v21 }
  0x2b   : > { %1161 = vmatpush3.msra.mxu0 %v370_v21  ;;  %1244 = vmatpush3.msra.mxu1 %v370_v21 }
  0x2c   : > { %1162 = vmatprep.subr.mxu0 %v369_v22  ;;  %1229 = vmatprep.subr.mxu1 %v369_v22 }
  0x2d   : > { %1163 = vmatpush3.msra.mxu0 %v369_v22  ;;  %1245 = vmatpush3.msra.mxu1 %v369_v22 }
  0x2e   : > { %786 = vperm.xlu1 %1274, %v716_v23   ;;  %781 = vperm.xlu0 %1273, %v715_v24  }
  0x2f   : > { %1164 = vmatprep.subr.mxu0 %v368_v25  ;;  %1230 = vmatprep.subr.mxu1 %v368_v25 }
  0x30   : > { %1165 = vmatpush3.msra.mxu0 %v368_v25  ;;  %1246 = vmatpush3.msra.mxu1 %v368_v25 }
  0x31   : > { %1166 = vmatprep.subr.mxu0 %v367_v26  ;;  %1231 = vmatprep.subr.mxu1 %v367_v26 }
  0x32   : > { %1167 = vmatpush3.msra.mxu0 %v367_v26  ;;  %1247 = vmatpush3.msra.mxu1 %v367_v26 }
  0x33   : > { %796 = vperm.xlu1 %1274, %v718_v27   ;;  %791 = vperm.xlu0 %1273, %v717_v28  }
  0x34   : > { %1168 = vmatprep.mubr.f32.mxu0 %v335_v29  ;;  %1192 = vmatprep.mubr.f32.mxu1 %v351_v30 }
  0x35   : > { %1169 = vmatmul.mubr.f32.vlgmr.msra.gmra.mxu0 %v336_v31  ;;  %1193 = vmatmul.mubr.f32.vlgmr.msra.gmra.mxu1 %v352_v32 }
  0x36   : > { %1171 = vmatprep.mubr.f32.mxu0 %v337_v33  ;;  %1195 = vmatprep.mubr.f32.mxu1 %v353_v34 }
  0x37   : > { %806 = vperm.xlu1 %1274, %v720_v35   ;;  %801 = vperm.xlu0 %1273, %v719_v36  }
  0x39   : > { %1172 = vmatmul.mubr.f32.gmra.mxu0 %v338_v37  ;;  %1196 = vmatmul.mubr.f32.gmra.mxu1 %v354_v38 }
  0x3a   : > { %1174 = vmatprep.mubr.f32.mxu0 %v339_v39  ;;  %1198 = vmatprep.mubr.f32.mxu1 %v355_v40 }
  0x3b   : > { %816 = vperm.xlu1 %1274, %v722_v41   ;;  %811 = vperm.xlu0 %1273, %v721_v42  }
  0x3d   : > { %1175 = vmatmul.mubr.f32.gmra.mxu0 %v340_v43  ;;  %1199 = vmatmul.mubr.f32.gmra.mxu1 %v356_v44 }
  0x3e   : > { %1177 = vmatprep.mubr.f32.mxu0 %v341_v45  ;;  %1201 = vmatprep.mubr.f32.mxu1 %v357_v46 }
  0x3f   : > { %826 = vperm.xlu1 %1274, %v724_v47   ;;  %821 = vperm.xlu0 %1273, %v723_v48  }
  0x41   : > { %1178 = vmatmul.mubr.f32.gmra.mxu0 %v342_v49  ;;  %1202 = vmatmul.mubr.f32.gmra.mxu1 %v358_v50 }
  0x42   : > { %1180 = vmatprep.mubr.f32.mxu0 %v343_v51  ;;  %1204 = vmatprep.mubr.f32.mxu1 %v359_v52 }
  0x43   : > { %836 = vperm.xlu1 %1274, %v726_v53   ;;  %831 = vperm.xlu0 %1273, %v725_v54  }
  0x45   : > { %1181 = vmatmul.mubr.f32.gmra.mxu0 %v344_v55  ;;  %1205 = vmatmul.mubr.f32.gmra.mxu1 %v360_v56 }
  0x46   : > { %1183 = vmatprep.mubr.f32.mxu0 %v345_v57  ;;  %1207 = vmatprep.mubr.f32.mxu1 %v361_v58 }
  0x47   : > { %846 = vperm.xlu1 %1274, %v728_v59   ;;  %841 = vperm.xlu0 %1273, %v727_v60  }
  0x49   : > { %1184 = vmatmul.mubr.f32.gmra.mxu0 %v346_v61  ;;  %1208 = vmatmul.mubr.f32.gmra.mxu1 %v362_v62 }
  0x4a   : > { %1186 = vmatprep.mubr.f32.mxu0 %v347_v63  ;;  %1210 = vmatprep.mubr.f32.mxu1 %v363_v0 }
  0x4b   : > { %856 = vperm.xlu1 %1274, %v730_v1   ;;  %851 = vperm.xlu0 %1273, %v729_v2  }
  0x4d   : > { %1187 = vmatmul.mubr.f32.gmra.mxu0 %v348_v3  ;;  %1211 = vmatmul.mubr.f32.gmra.mxu1 %v364_v4 }
  0x4e   : > { %1189 = vmatprep.mubr.f32.mxu0 %v349_v5  ;;  %1213 = vmatprep.mubr.f32.mxu1 %v365_v6 }
  0x4f   : > { %866 = vperm.xlu1 %1274, %v732_v7   ;;  %861 = vperm.xlu0 %1273, %v731_v8  }
  0x51   : > { %1190 = vmatmul.mubr.f32.gmra.mxu0 %v350_v9  ;;  %1214 = vmatmul.mubr.f32.gmra.mxu1 %v366_v10 }
  0x53   : > { %876 = vperm.xlu1 %1274, %v734_v11   ;;  %871 = vperm.xlu0 %1273, %v733_v12  }
  0x57   : > { %886 = vperm.xlu1 %1274, %v736_v13   ;;  %881 = vperm.xlu0 %1273, %v735_v14  }
  0x5b   : > { %896 = vperm.xlu1 %1274, %v738_v15   ;;  %891 = vperm.xlu0 %1273, %v737_v16  }
  0x95   : > { %v752_v17 = vpop.permute.xlu1 %751  ;;  %v742_v18 = vpop.permute.xlu0 %741 }
  0x9a   : > { %v757_v19 = vpop.permute.xlu1 %756  ;;  %v747_v20 = vpop.permute.xlu0 %746 }
  0x9f   : > { %v767_v21 = vpop.permute.xlu1 %766  ;;  %v762_v22 = vpop.permute.xlu0 %761 }
  0xa4   : > { %v777_v23 = vpop.permute.xlu1 %776  ;;  %v1464_v24 = vpop.permute.xlu0 %771 }
  0xa9   : > { %v1466_v25 = vpop.permute.xlu1 %786  ;;  %v1468_v26 = vpop.permute.xlu0 %781 }
  0xae   : > { %v1470_v27 = vpop.permute.xlu1 %796  ;;  %v1472_v28 = vpop.permute.xlu0 %791 }
  0xb2   : > { %v1474_v29 = vpop.permute.xlu1 %806  ;;  %v1476_v30 = vpop.permute.xlu0 %801 }
  0xb6   : > { %v1478_v31 = vpop.permute.xlu1 %816  ;;  %v1480_v32 = vpop.permute.xlu0 %811 }
  0xba   : > { %v827_v33 = vpop.permute.xlu1 %826  ;;  %v822_v34 = vpop.permute.xlu0 %821 }
  0xbe   : > { %v837_v35 = vpop.permute.xlu1 %836  ;;  %v832_v36 = vpop.permute.xlu0 %831 }
  0xc2   : > { %v847_v37 = vpop.permute.xlu1 %846  ;;  %v842_v38 = vpop.permute.xlu0 %841 }
  0xc6   : > { %v857_v45 = vpop.permute.xlu1 %856  ;;  %v852_v50 = vpop.permute.xlu0 %851 }
  0xca   : > { %v867_v59 = vpop.permute.xlu1 %866  ;;  %v862_v0 = vpop.permute.xlu0 %861 }
  0xce   : > { %v877_v9 = vpop.permute.xlu1 %876  ;;  %v872_v14 = vpop.permute.xlu0 %871 }
  0xf5   : > { %v1170_v39 = vpop.f32.mrf.mxu0  ;;  %v1194_v40 = vpop.f32.mrf.mxu1 }
  0xf6   : > { %v900_v41 = vadd.f32 %v1170_v39, %v747_v20  ;;  %v916_v42 = vadd.f32 %v1194_v40, %v827_v33 }
  0xf7   : > { %v449_v43 = vpop.f32.mrf.mxu0  ;;  %v529_v44 = vpop.f32.mrf.mxu1 }
  0xf8   : > { %932 = vst [vmem:[%s1486_s8 + $0x8] sm:$0xff] %v900_v41  ;;  %948 = vst [vmem:[%s1486_s8 + $0x88] sm:$0xff] %v916_v42  ;;  %v899_v46 = vadd.f32 %v742_v18, %v449_v43  ;;  %v915_v47 = vadd.f32 %v822_v34, %v529_v44 }
  0xf9   : > { %v1173_v48 = vpop.f32.mrf.mxu0  ;;  %v1197_v49 = vpop.f32.mrf.mxu1 }
  0xfa   : > { %931 = vst [vmem:[%s1486_s8] sm:$0xff] %v899_v46  ;;  %947 = vst [vmem:[%s1486_s8 + $0x80] sm:$0xff] %v915_v47  ;;  %v902_v51 = vadd.f32 %v1173_v48, %v757_v19  ;;  %v918_v52 = vadd.f32 %v1197_v49, %v837_v35  ;;  %v882_v35 = vpop.permute.xlu0 %881 }
  0xfb   : > { %v459_v53 = vpop.f32.mrf.mxu0  ;;  %v539_v54 = vpop.f32.mrf.mxu1 }
  0xfc   : > { %934 = vst [vmem:[%s1486_s8 + $0x18] sm:$0xff] %v902_v51  ;;  %950 = vst [vmem:[%s1486_s8 + $0x98] sm:$0xff] %v918_v52  ;;  %v901_v55 = vadd.f32 %v752_v17, %v459_v53  ;;  %v917_v56 = vadd.f32 %v832_v36, %v539_v54 }
  0xfd   : > { %v1176_v57 = vpop.f32.mrf.mxu0  ;;  %v1200_v58 = vpop.f32.mrf.mxu1 }
  0xfe   : > { %933 = vst [vmem:[%s1486_s8 + $0x10] sm:$0xff] %v901_v55  ;;  %949 = vst [vmem:[%s1486_s8 + $0x90] sm:$0xff] %v917_v56  ;;  %v904_v60 = vadd.f32 %v1176_v57, %v767_v21  ;;  %v920_v61 = vadd.f32 %v1200_v58, %v847_v37  ;;  %v892_v46 = vpop.permute.xlu0 %891 }
  0xff   : > { %v469_v62 = vpop.f32.mrf.mxu0  ;;  %v549_v63 = vpop.f32.mrf.mxu1 }
 0x100   : > { %936 = vst [vmem:[%s1486_s8 + $0x28] sm:$0xff] %v904_v60  ;;  %952 = vst [vmem:[%s1486_s8 + $0xa8] sm:$0xff] %v920_v61  ;;  %v903_v1 = vadd.f32 %v762_v22, %v469_v62  ;;  %v919_v2 = vadd.f32 %v842_v38, %v549_v63 }
 0x101   : > { %v1179_v3 = vpop.f32.mrf.mxu0  ;;  %v1203_v4 = vpop.f32.mrf.mxu1 }
 0x102   : > { %935 = vst [vmem:[%s1486_s8 + $0x20] sm:$0xff] %v903_v1  ;;  %951 = vst [vmem:[%s1486_s8 + $0xa0] sm:$0xff] %v919_v2  ;;  %v906_v5 = vadd.f32 %v1179_v3, %v777_v23  ;;  %v922_v6 = vadd.f32 %v1203_v4, %v857_v45  ;;  %v887_v23 = vpop.permute.xlu1 %886 }
 0x103   : > { %v479_v7 = vpop.f32.mrf.mxu0  ;;  %v559_v8 = vpop.f32.mrf.mxu1 }
 0x104   : > { %938 = vst [vmem:[%s1486_s8 + $0x38] sm:$0xff] %v906_v5  ;;  %954 = vst [vmem:[%s1486_s8 + $0xb8] sm:$0xff] %v922_v6  ;;  %v905_v10 = vadd.f32 %v1464_v24, %v479_v7  ;;  %v921_v11 = vadd.f32 %v852_v50, %v559_v8 }
 0x105   : > { %v1182_v12 = vpop.f32.mrf.mxu0  ;;  %v1206_v13 = vpop.f32.mrf.mxu1 }
 0x106   : > { %937 = vst [vmem:[%s1486_s8 + $0x30] sm:$0xff] %v905_v10  ;;  %953 = vst [vmem:[%s1486_s8 + $0xb0] sm:$0xff] %v921_v11  ;;  %v908_v15 = vadd.f32 %v1182_v12, %v1466_v25  ;;  %v924_v16 = vadd.f32 %v1206_v13, %v867_v59  ;;  %v897_v42 = vpop.permute.xlu1 %896 }
 0x107   : > { %v489_v17 = vpop.f32.mrf.mxu0  ;;  %v569_v18 = vpop.f32.mrf.mxu1 }
 0x108   : > { %940 = vst [vmem:[%s1486_s8 + $0x48] sm:$0xff] %v908_v15  ;;  %956 = vst [vmem:[%s1486_s8 + $0xc8] sm:$0xff] %v924_v16  ;;  %v907_v19 = vadd.f32 %v1468_v26, %v489_v17  ;;  %v923_v20 = vadd.f32 %v862_v0, %v569_v18 }
 0x109   : > { %v1185_v21 = vpop.f32.mrf.mxu0  ;;  %v1209_v22 = vpop.f32.mrf.mxu1 }
 0x10a   : > { %939 = vst [vmem:[%s1486_s8 + $0x40] sm:$0xff] %v907_v19  ;;  %955 = vst [vmem:[%s1486_s8 + $0xc0] sm:$0xff] %v923_v20  ;;  %v910_v24 = vadd.f32 %v1185_v21, %v1470_v27  ;;  %v926_v25 = vadd.f32 %v1209_v22, %v877_v9 }
 0x10b   : > { %v499_v33 = vpop.f32.mrf.mxu0  ;;  %v579_v34 = vpop.f32.mrf.mxu1 }
 0x10c   : > { %942 = vst [vmem:[%s1486_s8 + $0x58] sm:$0xff] %v910_v24  ;;  %958 = vst [vmem:[%s1486_s8 + $0xd8] sm:$0xff] %v926_v25  ;;  %v909_v26 = vadd.f32 %v1472_v28, %v499_v33  ;;  %v925_v36 = vadd.f32 %v872_v14, %v579_v34 }
 0x10d   : > { %v1188_v37 = vpop.f32.mrf.mxu0  ;;  %v1212_v38 = vpop.f32.mrf.mxu1 }
 0x10e   : > { %941 = vst [vmem:[%s1486_s8 + $0x50] sm:$0xff] %v909_v26  ;;  %957 = vst [vmem:[%s1486_s8 + $0xd0] sm:$0xff] %v925_v36  ;;  %v912_v39 = vadd.f32 %v1188_v37, %v1474_v29  ;;  %v928_v27 = vadd.f32 %v1212_v38, %v887_v23 }
 0x10f   : > { %v509_v40 = vpop.f32.mrf.mxu0  ;;  %v589_v41 = vpop.f32.mrf.mxu1 }
 0x110   : > { %944 = vst [vmem:[%s1486_s8 + $0x68] sm:$0xff] %v912_v39  ;;  %960 = vst [vmem:[%s1486_s8 + $0xe8] sm:$0xff] %v928_v27  ;;  %v911_v28 = vadd.f32 %v1476_v30, %v509_v40  ;;  %v927_v43 = vadd.f32 %v882_v35, %v589_v41 }
 0x111   : > { %v1191_v44 = vpop.f32.mrf.mxu0  ;;  %v1215_v45 = vpop.f32.mrf.mxu1 }
 0x112   : > { %943 = vst [vmem:[%s1486_s8 + $0x60] sm:$0xff] %v911_v28  ;;  %959 = vst [vmem:[%s1486_s8 + $0xe0] sm:$0xff] %v927_v43  ;;  %v914_v29 = vadd.f32 %v1191_v44, %v1478_v31  ;;  %v930_v47 = vadd.f32 %v1215_v45, %v897_v42 }
 0x113   : > { %v519_v48 = vpop.f32.mrf.mxu0  ;;  %v599_v49 = vpop.f32.mrf.mxu1 }
 0x114   : > { %946 = vst [vmem:[%s1486_s8 + $0x78] sm:$0xff] %v914_v29  ;;  %962 = vst [vmem:[%s1486_s8 + $0xf8] sm:$0xff] %v930_v47  ;;  %v913_v50 = vadd.f32 %v1480_v32, %v519_v48  ;;  %v929_v51 = vadd.f32 %v892_v46, %v599_v49 }
 0x116   : > { %945 = vst [vmem:[%s1486_s8 + $0x70] sm:$0xff] %v913_v50  ;;  %961 = vst [vmem:[%s1486_s8 + $0xf0] sm:$0xff] %v929_v51 }
 0x117 PF: > { %s13_s14 = sadd.s32 1, %s1297_s14   ;;  %s1542_s12 = smov %s1293_s13 }
 0x118   : > { %p10_p5 = scmp.ge.s32.totalorder %s13_s14, 4   ;;  %s1543_s13 = smov %s1545_s15 }
 0x11a   :  { %12 = sbr.rel (!%p10_p5) target bundleno = 2 (0x2), region = 76 }

</bundles_post_ra>
